<compile_context>
chip_gen: v6e
topology: v6e:2x2x1
jax: 0.10.0
libtpu: 0.0.40
codegen_flags: <defaults>
</compile_context>

<pallas_src>
import jax
import jax.numpy as jnp
from jax.experimental import pallas as pl
from jax.experimental.pallas import tpu as pltpu

LANE = 128          # lane width / padded node & edge count per graph
SUB = 16            # rows of the small (pool / fc1-bias / output) blocks (bf16-tile aligned)
NUM_W = 12

# weight-slab indices
(W_NC1, W_NC2, W_NC3, W_EC1, W_EC2, W_EC3,
 W_FOLD, W_MTE, W_FC1X, W_FC2, W_FC3, W_FC4) = range(NUM_W)
# bias-slab rows
(B_NC1, B_NC2, B_NC3, B_EC1, B_EC2, B_EC3, B_FOLD, B_FC2, B_FC3, B_FC4) = range(10)


def _pad2d(a, rows, cols=LANE):
    out = jnp.zeros((rows, cols), jnp.float32)
    return out.at[:a.shape[0], :a.shape[1]].set(a.astype(jnp.float32))


# ------------------------------- fused kernel -------------------------------

def make_fused_kernel(compute_dtype):
    """One grid step == one graph. All operands are full-128-lane slabs."""
    NP = LANE                       # padded node rows
    EP = LANE                       # padded edge rows
    o_An = 0                        # normalized node adjacency        [NP, 128]
    o_Ae = o_An + NP                # normalized "edge graph" adjacency[EP, 128]
    o_Sf = o_Ae + EP                # scatter_mean @ A_edge (folded)   [NP, 128]
    o_Ab = o_Sf + NP                # rowsum(S) * b_ec3     (folded)   [NP, 128]
    o_x = o_Ab + NP                 # node features                    [NP, 128]
    o_ea = o_x + NP                 # edge features                    [EP, 128]
    o_pl = o_ea + EP                # mean-pool row (row 0)            [SUB,128]
    o_b1 = o_pl + SUB               # fc1 bias + folded x_global branch[SUB,128]
    data_rows = o_b1 + SUB          # = 800

    def kernel(w_ref, b_ref, d_ref, out_ref):
        f32 = jnp.float32
        cdt = compute_dtype
        mm = lambda a, b: jnp.dot(a, b, preferred_element_type=f32)
        bias = b_ref[...]                                   # [16,128] f32 (tiny, resident)

        def conv(A, h, wi, bi):
            # GCNConv:  A_hat @ (h @ W) + b     (all operands full 128 lanes, f32 accumulate)
            return mm(A, mm(h, w_ref[wi]).astype(cdt)) + bias[bi]

        # ---- node GCN stack (dropout is identity in eval mode) ----
        An = d_ref[o_An:o_An + NP, :]
        h = jnp.tanh(conv(An, d_ref[o_x:o_x + NP, :], W_NC1, B_NC1)).astype(cdt)
        h = jnp.tanh(conv(An, h, W_NC2, B_NC2)).astype(cdt)
        xn = conv(An, h, W_NC3, B_NC3)                      # f32 [128,128]

        # ---- edge GCN stack; last conv folded with scatter_mean:
        #      S @ (Ae @ (e W) + b)  ==  (S @ Ae) @ (e W) + rowsum(S) b ----
        Ae = d_ref[o_Ae:o_Ae + EP, :]
        e = jnp.tanh(conv(Ae, d_ref[o_ea:o_ea + EP, :], W_EC1, B_EC1)).astype(cdt)
        e = jnp.tanh(conv(Ae, e, W_EC2, B_EC2)).astype(cdt)
        agg = (mm(d_ref[o_Sf:o_Sf + NP, :], mm(e, w_ref[W_EC3]).astype(cdt))
               + d_ref[o_Ab:o_Ab + NP, :].astype(f32))

        # ---- node_transform + message_transform (weights folded on host) ----
        msg = (mm(xn.astype(cdt), w_ref[W_FOLD]) + mm(agg.astype(cdt), w_ref[W_MTE])
               + bias[B_FOLD])
        xn = xn + msg

        # ---- global mean pool (row 0 of pool block) + regressor MLP ----
        pooled = mm(d_ref[o_pl:o_pl + SUB, :], xn.astype(cdt))          # [SUB,128] f32
        h = jnp.maximum(mm(pooled.astype(cdt), w_ref[W_FC1X])
                        + d_ref[o_b1:o_b1 + SUB, :].astype(f32), 0.0)
        h = jnp.maximum(mm(h.astype(cdt), w_ref[W_FC2]) + bias[B_FC2], 0.0)
        h = jnp.maximum(mm(h.astype(cdt), w_ref[W_FC3]) + bias[B_FC3], 0.0)
        out_ref[...] = mm(h.astype(cdt), w_ref[W_FC4]) + bias[B_FC4]

    return kernel, data_rows


# --------------------- plain-JAX glue: graph ops + packing ---------------------

def gcn_dense_adj(edge_index, num_nodes):
    """Dense  D^-1/2 (A + I) D^-1/2  with aggregation at the target (col) node."""
    loops = jnp.arange(num_nodes)
    row = jnp.concatenate([edge_index[0], loops])
    col = jnp.concatenate([edge_index[1], loops])
    w = jnp.ones(row.shape[0], jnp.float32)
    deg = jnp.zeros((num_nodes,), jnp.float32).at[col].add(w)
    dinv = jnp.where(deg > 0, 1.0 / jnp.sqrt(deg), 0.0)
    norm = dinv[row] * dinv[col]
    return jnp.zeros((num_nodes, num_nodes), jnp.float32).at[col, row].add(norm)


def mean_matrix(index, num_groups):
    """M[g, i] = 1/count_g if index[i]==g else 0   (dense scatter_mean operator)."""
    onehot = (jnp.arange(num_groups)[:, None] == index[None, :]).astype(jnp.float32)
    cnt = onehot.sum(axis=1, keepdims=True)
    return jnp.where(cnt > 0, onehot / jnp.maximum(cnt, 1.0), 0.0)


def run_model(graphs, params, compute_dtype=jnp.bfloat16):
    """graphs: list of (x[n,ATOM], edge_index[2,e], edge_attr[e,BOND], natoms, nbonds, mw)."""
    (w_nc1, b_nc1, w_nc2, b_nc2, w_nc3, b_nc3,
     w_ec1, b_ec1, w_ec2, b_ec2, w_ec3, b_ec3,
     w_nt, b_nt, w_mt_n, w_mt_e, b_mt,
     w_fc1x, w_fc1g, b_fc1, w_fc2, b_fc2, w_fc3, b_fc3, w_fc4, b_fc4) = params

    # ---- host-side weight constant folding (f32) ----
    w_fold = w_nt @ w_mt_n                                  # [ATOM, ATOM]
    b_fold = b_nt @ w_mt_n + b_mt                           # [1, ATOM]

    # ---- resident weight slab [12,128,128] ----
    w_slab = jnp.stack([_pad2d(w, LANE, LANE) for w in (
        w_nc1, w_nc2, w_nc3, w_ec1, w_ec2, w_ec3,
        w_fold, w_mt_e, w_fc1x, w_fc2, w_fc3, w_fc4)]).astype(compute_dtype)

    # ---- resident bias slab [16,128], kept f32 ----
    b_slab = jnp.zeros((16, LANE), jnp.float32)
    for i, b in enumerate((b_nc1, b_nc2, b_nc3, b_ec1, b_ec2, b_ec3,
                           b_fold, b_fc2, b_fc3, b_fc4)):
        b_slab = b_slab.at[i, :b.shape[1]].set(b[0].astype(jnp.float32))

    kernel, data_rows = make_fused_kernel(compute_dtype)

    # ---- per-graph data slabs -> [G, data_rows, 128] ----
    slabs = []
    for (x, ei, ea, na, nb, mw) in graphs:
        n, e = x.shape[0], ea.shape[0]
        # dense-slab packing limits (see TODO(synk) about the sparse SpMM path)
        assert n <= LANE and e <= LANE and e >= n, (n, e)
        An = gcn_dense_adj(ei, n)                           # [n, n]
        Ae = gcn_dense_adj(ei, e)                           # [e, e]  (edge_attr as "nodes")
        S = mean_matrix(ei[0], n)                           # scatter_mean over source node
        S_fold = S @ Ae                                     # folds the last edge aggregation
        agg_b = S.sum(axis=1, keepdims=True) @ b_ec3        # rowsum(S) * b_ec3
        xg = (na + nb + mw) / 3.0                           # pooled x_global (mean pool, B=1)
        b_fc1_eff = xg * w_fc1g + b_fc1                     # folds the x_global branch of fc1
        pool = jnp.zeros((SUB, LANE), jnp.float32).at[0, :n].set(1.0 / n)
        blk = jnp.concatenate([
            _pad2d(An, LANE), _pad2d(Ae, LANE), _pad2d(S_fold, LANE), _pad2d(agg_b, LANE),
            _pad2d(x, LANE), _pad2d(ea, LANE), pool, _pad2d(b_fc1_eff, SUB)], axis=0)
        slabs.append(blk)
    G = len(graphs)
    data_slab = jnp.stack(slabs).astype(compute_dtype)
    assert data_slab.shape == (G, data_rows, LANE)

    # ---- advisory cost estimate ----
    big_mm, small_mm = 14, 5
    flops = G * (big_mm * 2 * LANE ** 3 + small_mm * 2 * SUB * LANE * LANE)
    cost = pl.CostEstimate(
        flops=int(flops),
        transcendentals=int(G * 4 * LANE * LANE),
        bytes_accessed=int(w_slab.size * w_slab.dtype.itemsize
                           + b_slab.size * 4
                           + data_slab.size * data_slab.dtype.itemsize
                           + G * SUB * LANE * 4))

    out_pad = pl.pallas_call(
        kernel,
        out_shape=jax.ShapeDtypeStruct((G, SUB, LANE), jnp.float32),
        grid_spec=pltpu.PrefetchScalarGridSpec(
            num_scalar_prefetch=0,
            grid=(G,),
            in_specs=[
                # weights + biases: constant block index -> DMA'd once, VMEM-resident
                pl.BlockSpec((NUM_W, LANE, LANE), lambda g: (0, 0, 0)),
                pl.BlockSpec((16, LANE), lambda g: (0, 0)),
                # per-graph data slab: pipelined / double-buffered by the BlockSpec machinery
                pl.BlockSpec((None, data_rows, LANE), lambda g: (g, 0, 0)),
            ],
            out_specs=pl.BlockSpec((None, SUB, LANE), lambda g: (g, 0, 0)),
        ),
        compiler_params=pltpu.CompilerParams(
            dimension_semantics=("parallel",),              # v7x: shard graphs over 2 TCs
            vmem_limit_bytes=32 * 1024 * 1024),             # explicit budget (fits v5e/v6e/v7x)
        cost_estimate=cost,
    )(w_slab, b_slab, data_slab)

    return out_pad[:, 0, 0:1]                               # [G, 1]


def reference_forward(graphs, params):
    """Pure-JAX f32 reference: original (unfolded, unpadded) forward applied per graph."""
    (w_nc1, b_nc1, w_nc2, b_nc2, w_nc3, b_nc3,
     w_ec1, b_ec1, w_ec2, b_ec2, w_ec3, b_ec3,
     w_nt, b_nt, w_mt_n, w_mt_e, b_mt,
     w_fc1x, w_fc1g, b_fc1, w_fc2, b_fc2, w_fc3, b_fc3, w_fc4, b_fc4) = params
    gcn = lambda A, h, w, b: A @ (h @ w) + b
    outs = []
    for (x, ei, ea, na, nb, mw) in graphs:
        n, e = x.shape[0], ea.shape[0]
        An = gcn_dense_adj(ei, n)
        Ae = gcn_dense_adj(ei, e)
        S = mean_matrix(ei[0], n)
        h = jnp.tanh(gcn(An, x, w_nc1, b_nc1))
        h = jnp.tanh(gcn(An, h, w_nc2, b_nc2))
        xn = gcn(An, h, w_nc3, b_nc3)
        ee = jnp.tanh(gcn(Ae, ea, w_ec1, b_ec1))
        ee = jnp.tanh(gcn(Ae, ee, w_ec2, b_ec2))
        ee = gcn(Ae, ee, w_ec3, b_ec3)
        agg = S @ ee
        xt = xn @ w_nt + b_nt
        xn = xn + (xt @ w_mt_n + agg @ w_mt_e + b_mt)
        xg = (na + nb + mw) / 3.0
        pooled = xn.mean(axis=0, keepdims=True)             # global mean pool
        h = jax.nn.relu(pooled @ w_fc1x + xg * w_fc1g + b_fc1)
        h = jax.nn.relu(h @ w_fc2 + b_fc2)
        h = jax.nn.relu(h @ w_fc3 + b_fc3)
        outs.append(h @ w_fc4 + b_fc4)                      # [1, 1]
    return jnp.concatenate(outs, axis=0)                    # [G, 1]


if __name__ == "__main__":
    # ---- small, module-consistent sizes ----
    ATOM, BOND = 8, 6                        # atom_feature_dim, bond_feature_dim
    NH, EH, MSG = 16, 16, 12                 # node/edge hidden, message_channels
    R1, R2, R3, OUT = 128, 64, 32, 1         # regressor widths
    G = 8                                    # graphs batched into one pallas_call (grid size)
    N, E = 16, 24                            # nodes / edges per graph (E >= N, torch quirk)

    key = jax.random.PRNGKey(0)
    ks = iter(jax.random.split(key, 64))
    nrm = lambda shape: 0.2 * jax.random.normal(next(ks), shape, jnp.float32)

    # ---- deterministic parameters (shapes from __init__); biases kept as [1, d] ----
    params = (
        nrm((ATOM, NH)), nrm((1, NH)),     # node_conv1
        nrm((NH, NH)),   nrm((1, NH)),     # node_conv2
        nrm((NH, ATOM)), nrm((1, ATOM)),   # node_conv3
        nrm((BOND, EH)), nrm((1, EH)),     # edge_conv1
        nrm((EH, EH)),   nrm((1, EH)),     # edge_conv2
        nrm((EH, BOND)), nrm((1, BOND)),   # edge_conv3
        nrm((ATOM, MSG)), nrm((1, MSG)),   # node_transform
        nrm((MSG, ATOM)), nrm((BOND, ATOM)), nrm((1, ATOM)),  # message_transform (split)
        nrm((ATOM, R1)), nrm((1, R1)), nrm((1, R1)),          # fc1 (x-part, global-part, bias)
        nrm((R1, R2)), nrm((1, R2)),       # fc2
        nrm((R2, R3)), nrm((1, R3)),       # fc3
        nrm((R3, OUT)), nrm((1, OUT)),     # fc4
    )

    # ---- G deterministic synthetic graphs ----
    graphs = []
    for g in range(G):
        ei = jax.random.randint(next(ks), (2, E), 0, N)
        xg = nrm((N, ATOM))
        eg = nrm((E, BOND))
        natoms = jnp.float32(8.0 + g)
        nbonds = jnp.float32(12.0 + g)
        mw = jnp.float32(90.0 + 7.5 * g)
        graphs.append((xg, ei, eg, natoms, nbonds, mw))

    # production path (bf16 slabs) + exact-algebra check path (f32 slabs)
    out_bf16 = jax.block_until_ready(run_model(graphs, params, jnp.bfloat16))
    out_f32 = jax.block_until_ready(run_model(graphs, params, jnp.float32))
    ref = jax.block_until_ready(reference_forward(graphs, params))

    assert out_bf16.shape == (G, 1) and out_f32.shape == (G, 1)
    # f32 slabs: kernel algebra (folding + padding) must match the unfolded reference tightly
    assert jnp.allclose(out_f32, ref, rtol=1e-4, atol=1e-4), (out_f32, ref)
    # bf16 slabs: agreement is limited by bf16 quantization of weights / activations
    scale = jnp.max(jnp.abs(ref))
    err = jnp.max(jnp.abs(out_bf16 - ref))
    assert err <= 0.06 * scale + 0.15, (float(err), float(scale), out_bf16, ref)
    print("KERNEL_OK")
</pallas_src>

<mosaic_0001>
module attributes {stable_mosaic.version = 11 : i64} {
  func.func @kernel(%arg0: i32, %arg1: memref<12x128x128xbf16, #tpu.memory_space<vmem>>, %arg2: memref<16x128xf32, #tpu.memory_space<vmem>>, %arg3: memref<1x800x128xbf16, #tpu.memory_space<vmem>>, %arg4: memref<1x16x128xf32, #tpu.memory_space<vmem>>) attributes {dimension_semantics = [#tpu.dimension_semantics<parallel>], iteration_bounds = array<i64: 8>, scalar_prefetch = 0 : i64, scratch_operands = 0 : i64, tpu.core_type = #tpu.core_type<tc>, window_params = [{pipeline_mode = #tpu.pipeline_mode<synchronous>, transform_indices = @transform_0, window_bounds = array<i64: 12, 128, 128>}, {pipeline_mode = #tpu.pipeline_mode<synchronous>, transform_indices = @transform_1, window_bounds = array<i64: 16, 128>}, {transform_indices = @transform_2, window_bounds = array<i64: 1, 800, 128>}, {transform_indices = @transform_3, window_bounds = array<i64: 1, 16, 128>}]} {
    %c0 = arith.constant 0 : index
    %c0_0 = arith.constant 0 : index
    %0 = vector.load %arg2[%c0, %c0_0] : memref<16x128xf32, #tpu.memory_space<vmem>>, vector<16x128xf32>
    %c0_1 = arith.constant 0 : index
    %c0_2 = arith.constant 0 : index
    %c0_3 = arith.constant 0 : index
    %1 = vector.load %arg3[%c0_1, %c0_2, %c0_3] : memref<1x800x128xbf16, #tpu.memory_space<vmem>>, vector<1x128x128xbf16>
    %2 = vector.shape_cast %1 : vector<1x128x128xbf16> to vector<128x128xbf16>
    %c0_4 = arith.constant 0 : index
    %c512 = arith.constant 512 : index
    %c0_5 = arith.constant 0 : index
    %3 = vector.load %arg3[%c0_4, %c512, %c0_5] : memref<1x800x128xbf16, #tpu.memory_space<vmem>>, vector<1x128x128xbf16>
    %4 = vector.shape_cast %3 : vector<1x128x128xbf16> to vector<128x128xbf16>
    %c0_6 = arith.constant 0 : index
    %c0_7 = arith.constant 0 : index
    %c0_8 = arith.constant 0 : index
    %5 = vector.load %arg1[%c0_6, %c0_7, %c0_8] : memref<12x128x128xbf16, #tpu.memory_space<vmem>>, vector<1x128x128xbf16>
    %6 = vector.shape_cast %5 : vector<1x128x128xbf16> to vector<128x128xbf16>
    %cst = arith.constant dense<0.000000e+00> : vector<128x128xf32>
    %7 = tpu.matmul %4, %6, %cst {dimension_numbers = #tpu.dot_dimension_numbers<[1], [0], [0], [1], [0, 0, 1, 1], [], []>} : vector<128x128xbf16>, vector<128x128xbf16>, vector<128x128xf32> -> vector<128x128xf32>
    %8 = arith.truncf %7 : vector<128x128xf32> to vector<128x128xbf16>
    %cst_9 = arith.constant dense<0.000000e+00> : vector<128x128xf32>
    %9 = tpu.matmul %2, %8, %cst_9 {dimension_numbers = #tpu.dot_dimension_numbers<[1], [0], [0], [1], [0, 0, 1, 1], [], []>} : vector<128x128xbf16>, vector<128x128xbf16>, vector<128x128xf32> -> vector<128x128xf32>
    %10 = vector.extract_strided_slice %0 {offsets = [0, 0], sizes = [1, 128], strides = [1, 1]} : vector<16x128xf32> to vector<1x128xf32>
    %11 = vector.shape_cast %10 : vector<1x128xf32> to vector<128xf32>
    %12 = vector.shape_cast %11 : vector<128xf32> to vector<1x128xf32>
    %13 = vector.broadcast %12 : vector<1x128xf32> to vector<128x128xf32>
    %14 = arith.addf %9, %13 : vector<128x128xf32>
    %15 = math.tanh %14 : vector<128x128xf32>
    %16 = arith.truncf %15 : vector<128x128xf32> to vector<128x128xbf16>
    %c1 = arith.constant 1 : index
    %c0_10 = arith.constant 0 : index
    %c0_11 = arith.constant 0 : index
    %17 = vector.load %arg1[%c1, %c0_10, %c0_11] : memref<12x128x128xbf16, #tpu.memory_space<vmem>>, vector<1x128x128xbf16>
    %18 = vector.shape_cast %17 : vector<1x128x128xbf16> to vector<128x128xbf16>
    %cst_12 = arith.constant dense<0.000000e+00> : vector<128x128xf32>
    %19 = tpu.matmul %16, %18, %cst_12 {dimension_numbers = #tpu.dot_dimension_numbers<[1], [0], [0], [1], [0, 0, 1, 1], [], []>} : vector<128x128xbf16>, vector<128x128xbf16>, vector<128x128xf32> -> vector<128x128xf32>
    %20 = arith.truncf %19 : vector<128x128xf32> to vector<128x128xbf16>
    %cst_13 = arith.constant dense<0.000000e+00> : vector<128x128xf32>
    %21 = tpu.matmul %2, %20, %cst_13 {dimension_numbers = #tpu.dot_dimension_numbers<[1], [0], [0], [1], [0, 0, 1, 1], [], []>} : vector<128x128xbf16>, vector<128x128xbf16>, vector<128x128xf32> -> vector<128x128xf32>
    %22 = vector.extract_strided_slice %0 {offsets = [1, 0], sizes = [1, 128], strides = [1, 1]} : vector<16x128xf32> to vector<1x128xf32>
    %23 = vector.shape_cast %22 : vector<1x128xf32> to vector<128xf32>
    %24 = vector.shape_cast %23 : vector<128xf32> to vector<1x128xf32>
    %25 = vector.broadcast %24 : vector<1x128xf32> to vector<128x128xf32>
    %26 = arith.addf %21, %25 : vector<128x128xf32>
    %27 = math.tanh %26 : vector<128x128xf32>
    %28 = arith.truncf %27 : vector<128x128xf32> to vector<128x128xbf16>
    %c2 = arith.constant 2 : index
    %c0_14 = arith.constant 0 : index
    %c0_15 = arith.constant 0 : index
    %29 = vector.load %arg1[%c2, %c0_14, %c0_15] : memref<12x128x128xbf16, #tpu.memory_space<vmem>>, vector<1x128x128xbf16>
    %30 = vector.shape_cast %29 : vector<1x128x128xbf16> to vector<128x128xbf16>
    %cst_16 = arith.constant dense<0.000000e+00> : vector<128x128xf32>
    %31 = tpu.matmul %28, %30, %cst_16 {dimension_numbers = #tpu.dot_dimension_numbers<[1], [0], [0], [1], [0, 0, 1, 1], [], []>} : vector<128x128xbf16>, vector<128x128xbf16>, vector<128x128xf32> -> vector<128x128xf32>
    %32 = arith.truncf %31 : vector<128x128xf32> to vector<128x128xbf16>
    %cst_17 = arith.constant dense<0.000000e+00> : vector<128x128xf32>
    %33 = tpu.matmul %2, %32, %cst_17 {dimension_numbers = #tpu.dot_dimension_numbers<[1], [0], [0], [1], [0, 0, 1, 1], [], []>} : vector<128x128xbf16>, vector<128x128xbf16>, vector<128x128xf32> -> vector<128x128xf32>
    %34 = vector.extract_strided_slice %0 {offsets = [2, 0], sizes = [1, 128], strides = [1, 1]} : vector<16x128xf32> to vector<1x128xf32>
    %35 = vector.shape_cast %34 : vector<1x128xf32> to vector<128xf32>
    %36 = vector.shape_cast %35 : vector<128xf32> to vector<1x128xf32>
    %37 = vector.broadcast %36 : vector<1x128xf32> to vector<128x128xf32>
    %38 = arith.addf %33, %37 : vector<128x128xf32>
    %c0_18 = arith.constant 0 : index
    %c128 = arith.constant 128 : index
    %c0_19 = arith.constant 0 : index
    %39 = vector.load %arg3[%c0_18, %c128, %c0_19] : memref<1x800x128xbf16, #tpu.memory_space<vmem>>, vector<1x128x128xbf16>
    %40 = vector.shape_cast %39 : vector<1x128x128xbf16> to vector<128x128xbf16>
    %c0_20 = arith.constant 0 : index
    %c640 = arith.constant 640 : index
    %c0_21 = arith.constant 0 : index
    %41 = vector.load %arg3[%c0_20, %c640, %c0_21] : memref<1x800x128xbf16, #tpu.memory_space<vmem>>, vector<1x128x128xbf16>
    %42 = vector.shape_cast %41 : vector<1x128x128xbf16> to vector<128x128xbf16>
    %c3 = arith.constant 3 : index
    %c0_22 = arith.constant 0 : index
    %c0_23 = arith.constant 0 : index
    %43 = vector.load %arg1[%c3, %c0_22, %c0_23] : memref<12x128x128xbf16, #tpu.memory_space<vmem>>, vector<1x128x128xbf16>
    %44 = vector.shape_cast %43 : vector<1x128x128xbf16> to vector<128x128xbf16>
    %cst_24 = arith.constant dense<0.000000e+00> : vector<128x128xf32>
    %45 = tpu.matmul %42, %44, %cst_24 {dimension_numbers = #tpu.dot_dimension_numbers<[1], [0], [0], [1], [0, 0, 1, 1], [], []>} : vector<128x128xbf16>, vector<128x128xbf16>, vector<128x128xf32> -> vector<128x128xf32>
    %46 = arith.truncf %45 : vector<128x128xf32> to vector<128x128xbf16>
    %cst_25 = arith.constant dense<0.000000e+00> : vector<128x128xf32>
    %47 = tpu.matmul %40, %46, %cst_25 {dimension_numbers = #tpu.dot_dimension_numbers<[1], [0], [0], [1], [0, 0, 1, 1], [], []>} : vector<128x128xbf16>, vector<128x128xbf16>, vector<128x128xf32> -> vector<128x128xf32>
    %48 = vector.extract_strided_slice %0 {offsets = [3, 0], sizes = [1, 128], strides = [1, 1]} : vector<16x128xf32> to vector<1x128xf32>
    %49 = vector.shape_cast %48 : vector<1x128xf32> to vector<128xf32>
    %50 = vector.shape_cast %49 : vector<128xf32> to vector<1x128xf32>
    %51 = vector.broadcast %50 : vector<1x128xf32> to vector<128x128xf32>
    %52 = arith.addf %47, %51 : vector<128x128xf32>
    %53 = math.tanh %52 : vector<128x128xf32>
    %54 = arith.truncf %53 : vector<128x128xf32> to vector<128x128xbf16>
    %c4 = arith.constant 4 : index
    %c0_26 = arith.constant 0 : index
    %c0_27 = arith.constant 0 : index
    %55 = vector.load %arg1[%c4, %c0_26, %c0_27] : memref<12x128x128xbf16, #tpu.memory_space<vmem>>, vector<1x128x128xbf16>
    %56 = vector.shape_cast %55 : vector<1x128x128xbf16> to vector<128x128xbf16>
    %cst_28 = arith.constant dense<0.000000e+00> : vector<128x128xf32>
    %57 = tpu.matmul %54, %56, %cst_28 {dimension_numbers = #tpu.dot_dimension_numbers<[1], [0], [0], [1], [0, 0, 1, 1], [], []>} : vector<128x128xbf16>, vector<128x128xbf16>, vector<128x128xf32> -> vector<128x128xf32>
    %58 = arith.truncf %57 : vector<128x128xf32> to vector<128x128xbf16>
    %cst_29 = arith.constant dense<0.000000e+00> : vector<128x128xf32>
    %59 = tpu.matmul %40, %58, %cst_29 {dimension_numbers = #tpu.dot_dimension_numbers<[1], [0], [0], [1], [0, 0, 1, 1], [], []>} : vector<128x128xbf16>, vector<128x128xbf16>, vector<128x128xf32> -> vector<128x128xf32>
    %60 = vector.extract_strided_slice %0 {offsets = [4, 0], sizes = [1, 128], strides = [1, 1]} : vector<16x128xf32> to vector<1x128xf32>
    %61 = vector.shape_cast %60 : vector<1x128xf32> to vector<128xf32>
    %62 = vector.shape_cast %61 : vector<128xf32> to vector<1x128xf32>
    %63 = vector.broadcast %62 : vector<1x128xf32> to vector<128x128xf32>
    %64 = arith.addf %59, %63 : vector<128x128xf32>
    %65 = math.tanh %64 : vector<128x128xf32>
    %66 = arith.truncf %65 : vector<128x128xf32> to vector<128x128xbf16>
    %c0_30 = arith.constant 0 : index
    %c256 = arith.constant 256 : index
    %c0_31 = arith.constant 0 : index
    %67 = vector.load %arg3[%c0_30, %c256, %c0_31] : memref<1x800x128xbf16, #tpu.memory_space<vmem>>, vector<1x128x128xbf16>
    %68 = vector.shape_cast %67 : vector<1x128x128xbf16> to vector<128x128xbf16>
    %c5 = arith.constant 5 : index
    %c0_32 = arith.constant 0 : index
    %c0_33 = arith.constant 0 : index
    %69 = vector.load %arg1[%c5, %c0_32, %c0_33] : memref<12x128x128xbf16, #tpu.memory_space<vmem>>, vector<1x128x128xbf16>
    %70 = vector.shape_cast %69 : vector<1x128x128xbf16> to vector<128x128xbf16>
    %cst_34 = arith.constant dense<0.000000e+00> : vector<128x128xf32>
    %71 = tpu.matmul %66, %70, %cst_34 {dimension_numbers = #tpu.dot_dimension_numbers<[1], [0], [0], [1], [0, 0, 1, 1], [], []>} : vector<128x128xbf16>, vector<128x128xbf16>, vector<128x128xf32> -> vector<128x128xf32>
    %72 = arith.truncf %71 : vector<128x128xf32> to vector<128x128xbf16>
    %cst_35 = arith.constant dense<0.000000e+00> : vector<128x128xf32>
    %73 = tpu.matmul %68, %72, %cst_35 {dimension_numbers = #tpu.dot_dimension_numbers<[1], [0], [0], [1], [0, 0, 1, 1], [], []>} : vector<128x128xbf16>, vector<128x128xbf16>, vector<128x128xf32> -> vector<128x128xf32>
    %c0_36 = arith.constant 0 : index
    %c384 = arith.constant 384 : index
    %c0_37 = arith.constant 0 : index
    %74 = vector.load %arg3[%c0_36, %c384, %c0_37] : memref<1x800x128xbf16, #tpu.memory_space<vmem>>, vector<1x128x128xbf16>
    %75 = vector.shape_cast %74 : vector<1x128x128xbf16> to vector<128x128xbf16>
    %76 = arith.extf %75 : vector<128x128xbf16> to vector<128x128xf32>
    %77 = arith.addf %73, %76 : vector<128x128xf32>
    %78 = arith.truncf %38 : vector<128x128xf32> to vector<128x128xbf16>
    %c6 = arith.constant 6 : index
    %c0_38 = arith.constant 0 : index
    %c0_39 = arith.constant 0 : index
    %79 = vector.load %arg1[%c6, %c0_38, %c0_39] : memref<12x128x128xbf16, #tpu.memory_space<vmem>>, vector<1x128x128xbf16>
    %80 = vector.shape_cast %79 : vector<1x128x128xbf16> to vector<128x128xbf16>
    %cst_40 = arith.constant dense<0.000000e+00> : vector<128x128xf32>
    %81 = tpu.matmul %78, %80, %cst_40 {dimension_numbers = #tpu.dot_dimension_numbers<[1], [0], [0], [1], [0, 0, 1, 1], [], []>} : vector<128x128xbf16>, vector<128x128xbf16>, vector<128x128xf32> -> vector<128x128xf32>
    %82 = arith.truncf %77 : vector<128x128xf32> to vector<128x128xbf16>
    %c7 = arith.constant 7 : index
    %c0_41 = arith.constant 0 : index
    %c0_42 = arith.constant 0 : index
    %83 = vector.load %arg1[%c7, %c0_41, %c0_42] : memref<12x128x128xbf16, #tpu.memory_space<vmem>>, vector<1x128x128xbf16>
    %84 = vector.shape_cast %83 : vector<1x128x128xbf16> to vector<128x128xbf16>
    %cst_43 = arith.constant dense<0.000000e+00> : vector<128x128xf32>
    %85 = tpu.matmul %82, %84, %cst_43 {dimension_numbers = #tpu.dot_dimension_numbers<[1], [0], [0], [1], [0, 0, 1, 1], [], []>} : vector<128x128xbf16>, vector<128x128xbf16>, vector<128x128xf32> -> vector<128x128xf32>
    %86 = arith.addf %81, %85 : vector<128x128xf32>
    %87 = vector.extract_strided_slice %0 {offsets = [6, 0], sizes = [1, 128], strides = [1, 1]} : vector<16x128xf32> to vector<1x128xf32>
    %88 = vector.shape_cast %87 : vector<1x128xf32> to vector<128xf32>
    %89 = vector.shape_cast %88 : vector<128xf32> to vector<1x128xf32>
    %90 = vector.broadcast %89 : vector<1x128xf32> to vector<128x128xf32>
    %91 = arith.addf %86, %90 : vector<128x128xf32>
    %92 = arith.addf %38, %91 : vector<128x128xf32>
    %c0_44 = arith.constant 0 : index
    %c768 = arith.constant 768 : index
    %c0_45 = arith.constant 0 : index
    %93 = vector.load %arg3[%c0_44, %c768, %c0_45] : memref<1x800x128xbf16, #tpu.memory_space<vmem>>, vector<1x16x128xbf16>
    %94 = vector.shape_cast %93 : vector<1x16x128xbf16> to vector<16x128xbf16>
    %95 = arith.truncf %92 : vector<128x128xf32> to vector<128x128xbf16>
    %cst_46 = arith.constant dense<0.000000e+00> : vector<16x128xf32>
    %96 = tpu.matmul %94, %95, %cst_46 {dimension_numbers = #tpu.dot_dimension_numbers<[1], [0], [0], [1], [0, 0, 1, 1], [], []>} : vector<16x128xbf16>, vector<128x128xbf16>, vector<16x128xf32> -> vector<16x128xf32>
    %97 = arith.truncf %96 : vector<16x128xf32> to vector<16x128xbf16>
    %c8 = arith.constant 8 : index
    %c0_47 = arith.constant 0 : index
    %c0_48 = arith.constant 0 : index
    %98 = vector.load %arg1[%c8, %c0_47, %c0_48] : memref<12x128x128xbf16, #tpu.memory_space<vmem>>, vector<1x128x128xbf16>
    %99 = vector.shape_cast %98 : vector<1x128x128xbf16> to vector<128x128xbf16>
    %cst_49 = arith.constant dense<0.000000e+00> : vector<16x128xf32>
    %100 = tpu.matmul %97, %99, %cst_49 {dimension_numbers = #tpu.dot_dimension_numbers<[1], [0], [0], [1], [0, 0, 1, 1], [], []>} : vector<16x128xbf16>, vector<128x128xbf16>, vector<16x128xf32> -> vector<16x128xf32>
    %c0_50 = arith.constant 0 : index
    %c784 = arith.constant 784 : index
    %c0_51 = arith.constant 0 : index
    %101 = vector.load %arg3[%c0_50, %c784, %c0_51] : memref<1x800x128xbf16, #tpu.memory_space<vmem>>, vector<1x16x128xbf16>
    %102 = vector.shape_cast %101 : vector<1x16x128xbf16> to vector<16x128xbf16>
    %103 = arith.extf %102 : vector<16x128xbf16> to vector<16x128xf32>
    %104 = arith.addf %100, %103 : vector<16x128xf32>
    %cst_52 = arith.constant 0.000000e+00 : f32
    %105 = vector.broadcast %cst_52 : f32 to vector<16x128xf32>
    %106 = arith.maximumf %104, %105 : vector<16x128xf32>
    %107 = arith.truncf %106 : vector<16x128xf32> to vector<16x128xbf16>
    %c9 = arith.constant 9 : index
    %c0_53 = arith.constant 0 : index
    %c0_54 = arith.constant 0 : index
    %108 = vector.load %arg1[%c9, %c0_53, %c0_54] : memref<12x128x128xbf16, #tpu.memory_space<vmem>>, vector<1x128x128xbf16>
    %109 = vector.shape_cast %108 : vector<1x128x128xbf16> to vector<128x128xbf16>
    %cst_55 = arith.constant dense<0.000000e+00> : vector<16x128xf32>
    %110 = tpu.matmul %107, %109, %cst_55 {dimension_numbers = #tpu.dot_dimension_numbers<[1], [0], [0], [1], [0, 0, 1, 1], [], []>} : vector<16x128xbf16>, vector<128x128xbf16>, vector<16x128xf32> -> vector<16x128xf32>
    %111 = vector.extract_strided_slice %0 {offsets = [7, 0], sizes = [1, 128], strides = [1, 1]} : vector<16x128xf32> to vector<1x128xf32>
    %112 = vector.shape_cast %111 : vector<1x128xf32> to vector<128xf32>
    %113 = vector.shape_cast %112 : vector<128xf32> to vector<1x128xf32>
    %114 = vector.broadcast %113 : vector<1x128xf32> to vector<16x128xf32>
    %115 = arith.addf %110, %114 : vector<16x128xf32>
    %cst_56 = arith.constant 0.000000e+00 : f32
    %116 = vector.broadcast %cst_56 : f32 to vector<16x128xf32>
    %117 = arith.maximumf %115, %116 : vector<16x128xf32>
    %118 = arith.truncf %117 : vector<16x128xf32> to vector<16x128xbf16>
    %c10 = arith.constant 10 : index
    %c0_57 = arith.constant 0 : index
    %c0_58 = arith.constant 0 : index
    %119 = vector.load %arg1[%c10, %c0_57, %c0_58] : memref<12x128x128xbf16, #tpu.memory_space<vmem>>, vector<1x128x128xbf16>
    %120 = vector.shape_cast %119 : vector<1x128x128xbf16> to vector<128x128xbf16>
    %cst_59 = arith.constant dense<0.000000e+00> : vector<16x128xf32>
    %121 = tpu.matmul %118, %120, %cst_59 {dimension_numbers = #tpu.dot_dimension_numbers<[1], [0], [0], [1], [0, 0, 1, 1], [], []>} : vector<16x128xbf16>, vector<128x128xbf16>, vector<16x128xf32> -> vector<16x128xf32>
    %122 = vector.extract_strided_slice %0 {offsets = [8, 0], sizes = [1, 128], strides = [1, 1]} : vector<16x128xf32> to vector<1x128xf32>
    %123 = vector.shape_cast %122 : vector<1x128xf32> to vector<128xf32>
    %124 = vector.shape_cast %123 : vector<128xf32> to vector<1x128xf32>
    %125 = vector.broadcast %124 : vector<1x128xf32> to vector<16x128xf32>
    %126 = arith.addf %121, %125 : vector<16x128xf32>
    %cst_60 = arith.constant 0.000000e+00 : f32
    %127 = vector.broadcast %cst_60 : f32 to vector<16x128xf32>
    %128 = arith.maximumf %126, %127 : vector<16x128xf32>
    %129 = arith.truncf %128 : vector<16x128xf32> to vector<16x128xbf16>
    %c11 = arith.constant 11 : index
    %c0_61 = arith.constant 0 : index
    %c0_62 = arith.constant 0 : index
    %130 = vector.load %arg1[%c11, %c0_61, %c0_62] : memref<12x128x128xbf16, #tpu.memory_space<vmem>>, vector<1x128x128xbf16>
    %131 = vector.shape_cast %130 : vector<1x128x128xbf16> to vector<128x128xbf16>
    %cst_63 = arith.constant dense<0.000000e+00> : vector<16x128xf32>
    %132 = tpu.matmul %129, %131, %cst_63 {dimension_numbers = #tpu.dot_dimension_numbers<[1], [0], [0], [1], [0, 0, 1, 1], [], []>} : vector<16x128xbf16>, vector<128x128xbf16>, vector<16x128xf32> -> vector<16x128xf32>
    %133 = vector.extract_strided_slice %0 {offsets = [9, 0], sizes = [1, 128], strides = [1, 1]} : vector<16x128xf32> to vector<1x128xf32>
    %134 = vector.shape_cast %133 : vector<1x128xf32> to vector<128xf32>
    %135 = vector.shape_cast %134 : vector<128xf32> to vector<1x128xf32>
    %136 = vector.broadcast %135 : vector<1x128xf32> to vector<16x128xf32>
    %137 = arith.addf %132, %136 : vector<16x128xf32>
    %c0_64 = arith.constant 0 : index
    %c0_65 = arith.constant 0 : index
    %c0_66 = arith.constant 0 : index
    %138 = vector.load %arg4[%c0_64, %c0_65, %c0_66] : memref<1x16x128xf32, #tpu.memory_space<vmem>>, vector<1x16x128xf32>
    %139 = vector.shape_cast %138 : vector<1x16x128xf32> to vector<16x128xf32>
    %140 = vector.shape_cast %137 : vector<16x128xf32> to vector<1x16x128xf32>
    tpu.vector_store %arg4[%c0_64, %c0_65, %c0_66], %140 {strides = array<i32>} : memref<1x16x128xf32, #tpu.memory_space<vmem>>, vector<1x16x128xf32>,
    return
  }
  func.func @transform_0(%arg0: i32) -> (i32, i32, i32) {
    %c0_i32 = arith.constant 0 : i32
    %c0_i32_0 = arith.constant 0 : i32
    %c0_i32_1 = arith.constant 0 : i32
    %c0_i32_2 = arith.constant 0 : i32
    return %c0_i32, %c0_i32_0, %c0_i32_1 : i32, i32, i32
  }
  func.func @transform_1(%arg0: i32) -> (i32, i32) {
    %c0_i32 = arith.constant 0 : i32
    %c0_i32_0 = arith.constant 0 : i32
    %c0_i32_1 = arith.constant 0 : i32
    return %c0_i32, %c0_i32_0 : i32, i32
  }
  func.func @transform_2(%arg0: i32) -> (i32, i32, i32) {
    %c0_i32 = arith.constant 0 : i32
    %c0_i32_0 = arith.constant 0 : i32
    %c0_i32_1 = arith.constant 0 : i32
    return %arg0, %c0_i32, %c0_i32_0 : i32, i32, i32
  }
  func.func @transform_3(%arg0: i32) -> (i32, i32, i32) {
    %c0_i32 = arith.constant 0 : i32
    %c0_i32_0 = arith.constant 0 : i32
    %c0_i32_1 = arith.constant 0 : i32
    return %arg0, %c0_i32, %c0_i32_0 : i32, i32, i32
  }
}

</mosaic_0001>

<bundles_post_ra>
// kernel: tpu_custom_call.1
= control target key start
LH: loop header
LB: loop body
LE: loop exit
PB: predicated region body
PF: predicated region fallthrough
CT: control target
= control target key end

     0   :  { %8 = vsyncpa [#allocation3], 0  ;;  %s5380_s0 = inlined_call_operand.hbm [shape: bf16[12,128,128], index: 0, kind: input, shape index: {}]   ;;  %s5381_s1 = inlined_call_operand.hbm [shape: f32[16,128], index: 1, kind: input, shape index: {}]   ;;  %s5382_s2 = inlined_call_operand.hbm [shape: bf16[8,800,128], index: 2, kind: input, shape index: {}]   ;;  %s5383_s3 = inlined_call_operand.hbm [shape: f32[8,16,128], index: 3, kind: output, shape index: {}]  }
   0x1   :  { %9 = vsyncpa [#allocation6], 0 }
   0x2   :  { %10 = vsyncpa [#allocation4], 0 }
   0x3   :  { %12 = vsyncpa [#allocation4 + $0x1], 0  ;;  %s4825_s12 = smov 0   ;;  %s4827_s13 = smov 0  }
   0x4   :  { %s4829_s14 = smov 0   ;;  %s4831_s15 = smov 0  }
   0x5 LB: > { %s4846_s16 = sadd.s32 4294967295, %s4791_s15   ;;  %s3279_s17 = sadd.s32 4294967294, %s4791_s15   ;;  %s4791_s15 = sphi %s4831_s15, %s5410_s15   ;;  %s4787_s14 = sphi %s4829_s14, %s5409_s14   ;;  %s4783_s13 = sphi %s4827_s13, %s5408_s13   ;;  %s4779_s12 = sphi %s4825_s12, %s5407_s12  }
   0x6   : > { %s4850_s18 = sadd.s32 1, %s4791_s15   ;;  %s67_s19 = sadd.s32 1, %s4787_s14 }
   0x7   : > { %s64_s20 = ssub.s32 %s4791_s15, %s4850_s18  ;;  %p74_p0 = scmp.ne.s32.totalorder %s4787_s14, %s4783_s13 }
   0x8   : > { %p65_p1 = scmp.eq.s32.totalorder %s64_s20, 0  ;;  %p75_p2 = scmp.eq.s32.totalorder %s4791_s15, 0 }
   0x9   : > { %p80_p3 = scmp.ne.s32.totalorder %s4783_s13, %s4779_s12  ;;  %p5385_p4 = scmp.eq.s32.totalorder %s4846_s16, 0 }
   0xa   : > { %s4862_s21 = scalar_select %p65_p1, %s4787_s14, %s67_s19  }
   0xb   : > { %p4864_p5 = por %p75_p2, %p74_p0  ;;  %p4870_p6 = por %p5385_p4, %p80_p3 }
   0xc   : > { %p104_p7 = scmp.eq.s32.totalorder %s4846_s16, 7  ;;  %p110_p8 = scmp.eq.s32.totalorder %s3279_s17, 7 }
   0xd   : > { %s5391_s23 = scalar_select %p4870_p6, 1, 0 }
   0xe   : > { %p3280_p9 = scmp.ge.s32.totalorder %s4791_s15, 1  ;;  %p117_p10 = scmp.lt.s32.totalorder %s4791_s15, 9 }
   0xf   : > { %p4877_p11 = por %p104_p7, %p74_p0  ;;  %p4881_p12 = por %p110_p8, %p80_p3 }
  0x10   : > { %p4885_p13 = pnand %p3280_p9, %p117_p10  ;;  %s4793_s27 = smov [#allocation2]  }
  0x11   : > { %s5392_s24 = scalar_select %p4877_p11, 1, 0 }
  0x12   : > { %s5393_s25 = scalar_select %p4881_p12, 1, 0 }
  0x13   : > { %s5394_s26 = scalar_select %p4885_p13, 1, 0 }
  0x14   : > { %p4309_p1 = pneg %p4885_p13  ;;  %s129_s28 = sshll.u32 %s4793_s27, 4  ;;  %s130_s28 = int_to_ptr.vmem [resolvable:$true] %s129_s28 }
  0x15   : > { %p4326_p0 = scmp.lt.s32.totalorder %s4791_s15, 8  ;;  %s4794_s30 = smov [#allocation5]  }
  0x16   : > { %p4893_p2 = pnand %p4309_p1, %p5385_p4  ;;  %s142_s4 = sshll.u32 %s4794_s30, 4  ;;  %s143_s4 = int_to_ptr.vmem [resolvable:$true] %s142_s4 }
  0x17   : > { %s4650_s5 = scalar_lea.vmem %s130_s28, 12288  ;;  %p4658_p10 = scmp.lt.s32.totalorder %s130_s28, %s130_s28 }
  0x18   : > { %p4641_p3 = pneg %p4893_p2  ;;  %p4651_p7 = scmp.ne.s32.totalorder %s130_s28, %s4650_s5 }
  0x19   : > { %p4659_p12 = scmp.lt.s32.totalorder %s4650_s5, %s4650_s5 }
  0x1a   : > { %p4653_p8 = pnand %p4651_p7, %p4641_p3 }
  0x1b   : > { %p4660_p11 = por %p4659_p12, %p4658_p10 }
  0x1c   : > { %p4654_p9 = pneg %p4653_p8 }
  0x1e   : > { %p4661_p1 = pnand %p4660_p11, %p4654_p9 }
  0x20   : > { %4664 = shalt.err (!%p4661_p1)
}
  0x21   : > { %s5386_s6 = smov 64   ;;  %s5387_s7 = smov 4  }
  0x22   : > { %4312 = dma.hbm_to_vmem [thread:$0]  (!%p4893_p2), %s5380_s0, 12288, %s130_s28, [#allocation3], %s5386_s6, %s5386_s6, %s5387_s7  }
  0x23   : > { %p4915_p7 = pnand %p4326_p0, %p4864_p5  ;;  %s4676_s11 = scalar_lea.vmem %s143_s4, 256 }
  0x24   : > { %p4677_p11 = scmp.ne.s32.totalorder %s143_s4, %s4676_s11  ;;  %p4684_p9 = scmp.lt.s32.totalorder %s143_s4, %s143_s4 }
  0x25   : > { %p4685_p10 = scmp.lt.s32.totalorder %s4676_s11, %s4676_s11 }
  0x26   : > { %p4679_p12 = pnand %p4677_p11, %p4641_p3 }
  0x27   : > { %p4686_p1 = por %p4685_p10, %p4684_p9 }
  0x28   : > { %p4680_p8 = pneg %p4679_p12 }
  0x2a   : > { %p4687_p4 = pnand %p4686_p1, %p4680_p8 }
  0x2c   : > { %4690 = shalt.err (!%p4687_p4)
}
  0x2d   : > { %s4797_s17 = smov 128   ;;  %s4798_s19 = smov 8  }
  0x2e   : > { %4315 = dma.hbm_to_vmem [thread:$0]  (!%p4893_p2), %s5381_s1, 256, %s143_s4, [#allocation6], %s4797_s17, %s4797_s17, %s4798_s19  }
  0x2f   : > { %s156_s27 = sand.u32 1, %s4791_s15   ;;  %s158_s28 = sand.u32 1, %s4787_s14  }
  0x30   : > { %s4294_s30 = smul.u32 400, %s158_s28  ;;  %s4937_s29 = scalar_lea.sflag [#allocation3], %s156_s27 }
  0x31   : > { %s4295_s5 = smul.u32 6400, %s4791_s15  ;;  %p4693_p5 = pneg %p4915_p7 }
  0x32   : > { %s160_s6 = scalar_lea.vmem [#allocation7], %s4294_s30  ;;  %s4696_s19 = scalar_lea.hbm %s5382_s2, 51200 }
  0x33   : > { %s4933_s11 = scalar_lea.hbm %s5382_s2, %s4295_s5  ;;  %s167_s7 = sshll.u32 %s160_s6, 4  ;;  %s4935_s7 = int_to_ptr.vmem [resolvable:$true] %s167_s7 }
  0x34   : > { %s4691_s20 = scalar_lea.hbm %s4933_s11, 6400  ;;  %p4697_p3 = scmp.lt.s32.totalorder %s4933_s11, %s5382_s2 }
  0x35   : > { %p4692_p4 = scmp.ne.s32.totalorder %s4933_s11, %s4691_s20  ;;  %p4698_p11 = scmp.lt.s32.totalorder %s4696_s19, %s4691_s20 }
  0x37   : > { %p4694_p2 = pnand %p4693_p5, %p4692_p4  ;;  %p4699_p12 = por %p4698_p11, %p4697_p3 }
  0x39   : > { %p4695_p0 = pneg %p4694_p2 }
  0x3b   : > { %p4700_p8 = pnand %p4699_p12, %p4695_p0 }
  0x3d   : > { %4703 = shalt.err (!%p4700_p8)
}
  0x3e   : > { %s4704_s6 = scalar_lea.vmem %s4935_s7, 6400  ;;  %s4799_s27 = smov [#allocation7]  }
  0x3f   : > { %p4705_p9 = scmp.ne.s32.totalorder %s4935_s7, %s4704_s6  ;;  %s4709_s30 = sshll.u32 %s4799_s27, 4  ;;  %s4710_s30 = int_to_ptr.vmem [resolvable:$false] %s4709_s30 }
  0x40   : > { %s4711_s5 = scalar_lea.vmem %s4710_s30, 12800  ;;  %p4712_p4 = scmp.lt.s32.totalorder %s4935_s7, %s4710_s30 }
  0x41   : > { %p4707_p10 = pnand %p4705_p9, %p4693_p5  ;;  %p4713_p2 = scmp.lt.s32.totalorder %s4711_s5, %s4704_s6 }
  0x43   : > { %p4708_p1 = pneg %p4707_p10  ;;  %p4714_p6 = por %p4713_p2, %p4712_p4 }
  0x45   : > { %p4715_p13 = pnand %p4714_p6, %p4708_p1 }
  0x47   : > { %4718 = shalt.err (!%p4715_p13)
}
  0x48   : > { %s5397_s8 = smov 4   ;;  %s5398_s9 = smov 64  }
  0x49   : > { %4319 = dma.hbm_to_vmem [thread:$0]  (!%p4915_p7), %s4933_s11, 6400, %s4935_s7, %s4937_s29, %s5398_s9, %s5398_s9, %s5397_s8  }
  0x4a   : > { %p5399_p5 = scmp.ne.s32.totalorder %s5394_s26, 0 }
  0x4b   : > { %p5400_p0 = scmp.eq.s32.totalorder (!%p5399_p5), %s4846_s16, 0 }
  0x4c   : > { %179 = sbr.rel (%p5399_p5) target bundleno = 3787 (0xecb), region = 32 }
  0x51   : > { %4762 = dma.done.wait (%p5400_p0), [#allocation3], 12288   ;;  %p5401_p3 = pmov %p5400_p0 }
  0x52   : > { %p5402_p6 = pmov %p5400_p0 }
  0x53   : > { %4764 = vsyncadd (%p5401_p3), [#allocation3], 4294955008 }
  0x54   : > { %4766 = dma.done.wait (%p5402_p6), [#allocation6], 256   ;;  %p5403_p13 = pmov %p5400_p0 }
  0x55   : > { %s189_s10 = sand.u32 1, %s4846_s16   ;;  %s4973_s7 = sand.u32 1, %s4783_s13  }
  0x56   : > { %4768 = vsyncadd (%p5403_p13), [#allocation6], 4294967040  ;;  %s4296_s26 = smul.u32 400, %s4973_s7  ;;  %s190_s11 = scalar_lea.sflag [#allocation3], %s189_s10 }
  0x57   : > { %p5404_p7 = scmp.ne.s32.totalorder %s5391_s23, 0 }
  0x58   : > { %s4976_s29 = scalar_lea.vmem [#allocation7], %s4296_s26 }
  0x59   : > { %4770 = dma.done.wait (%p5404_p7), %s190_s11, 6400  }
  0x5a   : > { %4772 = vsyncadd (%p5404_p7), %s190_s11, 4294960896  ;;  %v4372_v0 = vld [vmem:[#allocation2 + $0x38] sm:$0xff]   ;;  %v4373_v1 = vld [vmem:[#allocation2 + $0x30] sm:$0xff]   ;;  %v468_v56 = vlaneseq  ;;  %vm4801_vm0 = vmmov 0   ;;  %s3288_s23 = sshll.u32 %s4973_s7, 4  ;;  %s3431_s17 = sshll.u32 %s4846_s16, 8 }
  0x5b   : > { %3746 = vmatprep.subr.bf16.mxu0 %v4372_v0  ;;  %v4374_v2 = vld [vmem:[#allocation2 + $0x28] sm:$0xff]   ;;  %v4375_v3 = vld [vmem:[#allocation2 + $0x20] sm:$0xff]   ;;  %v4376_v5 = vld [vmem:[#allocation2 + $0x18] sm:$0xff]   ;;  %s215_s20 = scalar_lea.vmem [#allocation8], %s3288_s23  ;;  %s5338_s28 = scalar_lea.hbm %s5383_s3, %s3431_s17 }
  0x5c   : > { %3747 = vmatpush3.bf16.msra.mxu0 %v4372_v0  ;;  %v4380_v4 = vld [vmem:[%s4976_s29 + $0x100] sm:$0xff]   ;;  %v4378_v7 = vld [vmem:[#allocation2 + $0x8] sm:$0xff]   ;;  %v4382_v10 = vld [vmem:[%s4976_s29 + $0x110] sm:$0xff]   ;;  %v5023_v57 = vshrl.u32 %v468_v56, 7  ;;  %s3187_s4 = sshll.u32 %s215_s20, 4  ;;  %s3174_s6 = scalar_lea.sflag [#allocation4], %s4973_s7  ;;  %s5333_s4 = int_to_ptr.vmem [resolvable:$true] %s3187_s4 }
  0x5d   : > { %3748 = vmatprep.subr.bf16.mxu0 %v4373_v1  ;;  %3762 = vmatprep.mubr.bf16.mxu0 %v4380_v4  ;;  %v4377_v6 = vld [vmem:[#allocation2 + $0x10] sm:$0xff]   ;;  %v4379_v8 = vld [vmem:[#allocation2] sm:$0xff]   ;;  %v4381_v9 = vld [vmem:[%s4976_s29 + $0x108] sm:$0xff]   ;;  %s4719_s27 = scalar_lea.vmem %s5333_s4, 256  ;;  %p5405_p12 = scmp.ne.s32.totalorder %s5392_s24, 0 }
  0x5e   : > { %v4383_v11 = vld [vmem:[%s4976_s29 + $0x118] sm:$0xff]   ;;  %v4384_v12 = vld [vmem:[%s4976_s29 + $0x120] sm:$0xff]   ;;  %v4385_v13 = vld [vmem:[%s4976_s29 + $0x128] sm:$0xff]   ;;  %v470_v58 = vsub.s32 0, %v5023_v57  ;;  %p4720_p11 = scmp.ne.s32.totalorder %s5333_s4, %s4719_s27  ;;  %s4802_s16 = smov [#allocation8]  }
  0x5f   : > { %v4386_v14 = vld [vmem:[%s4976_s29 + $0x130] sm:$0xff]   ;;  %v4387_v15 = vld [vmem:[%s4976_s29 + $0x138] sm:$0xff]   ;;  %v4991_v16 = vld [vmem:[%s4976_s29] sm:$0xff]   ;;  %s4723_s30 = sshll.u32 %s4802_s16, 4  ;;  %s4724_s30 = int_to_ptr.vmem [resolvable:$false] %s4723_s30 }
  0x60   : > { %3749 = vmatpush3.bf16.msra.mxu0 %v4373_v1  ;;  %3794 = vmatprep.mubr.bf16.mxu1 %v4991_v16  ;;  %v4396_v17 = vld [vmem:[#allocation2 + $0x78] sm:$0xff]   ;;  %v4397_v18 = vld [vmem:[#allocation2 + $0x70] sm:$0xff]   ;;  %v4398_v50 = vld [vmem:[#allocation2 + $0x68] sm:$0xff]   ;;  %p4721_p8 = pnand %p4720_p11, %p5405_p12  ;;  %s4725_s5 = scalar_lea.vmem %s4724_s30, 512 }
  0x61   : > { %3750 = vmatprep.subr.bf16.mxu0 %v4374_v2  ;;  %v4995_v43 = vld [vmem:[%s4976_s29 + $0x8] sm:$0xff]   ;;  %v4998_v44 = vld [vmem:[%s4976_s29 + $0x10] sm:$0xff]   ;;  %v5003_v45 = vld [vmem:[%s4976_s29 + $0x18] sm:$0xff]   ;;  %p4726_p10 = scmp.lt.s32.totalorder %s5333_s4, %s4724_s30  ;;  %p4727_p1 = scmp.lt.s32.totalorder %s4725_s5, %s4719_s27 }
  0x62   : > { %v5006_v46 = vld [vmem:[%s4976_s29 + $0x20] sm:$0xff]   ;;  %v5011_v47 = vld [vmem:[%s4976_s29 + $0x28] sm:$0xff]   ;;  %v5014_v48 = vld [vmem:[%s4976_s29 + $0x30] sm:$0xff]   ;;  %p4722_p9 = pneg %p4721_p8 }
  0x63   : > { %v5019_v49 = vld [vmem:[%s4976_s29 + $0x38] sm:$0xff]   ;;  %v4399_v51 = vld [vmem:[#allocation2 + $0x60] sm:$0xff]   ;;  %v4401_v53 = vld [vmem:[#allocation2 + $0x50] sm:$0xff]   ;;  %p4728_p4 = por %p4727_p1, %p4726_p10 }
  0x64   : > { %3751 = vmatpush3.bf16.msra.mxu0 %v4374_v2  ;;  %v4400_v52 = vld [vmem:[#allocation2 + $0x58] sm:$0xff]   ;;  %v4402_v54 = vld [vmem:[#allocation2 + $0x48] sm:$0xff]   ;;  %v4403_v55 = vld [vmem:[#allocation2 + $0x40] sm:$0xff]  }
  0x65   : > { %3752 = vmatprep.subr.bf16.mxu0 %v4375_v3  ;;  %v5026_v59 = vld [vmem:[#allocation5] sm:$0xff]  ;;  %p4729_p2 = pnand %p4728_p4, %p4722_p9 }
  0x66   : > { %v471_v61 = vrot.slane %v5026_v59, %v470_v58 }
  0x68   : > { %3753 = vmatpush3.bf16.msra.mxu0 %v4375_v3 }
  0x69   : > { %3754 = vmatprep.subr.bf16.mxu0 %v4376_v5 }
  0x6c   : > { %3755 = vmatpush3.bf16.msra.mxu0 %v4376_v5 }
  0x6d   : > { %3756 = vmatprep.subr.bf16.mxu0 %v4377_v6 }
  0x70   : > { %3757 = vmatpush3.bf16.msra.mxu0 %v4377_v6 }
  0x71   : > { %3758 = vmatprep.subr.bf16.mxu0 %v4378_v7 }
  0x74   : > { %3759 = vmatpush3.bf16.msra.mxu0 %v4378_v7 }
  0x75   : > { %3760 = vmatprep.subr.bf16.mxu0 %v4379_v8 }
  0x78   : > { %3761 = vmatpush3.bf16.msra.mxu0 %v4379_v8 }
  0x79   : > { %3810 = vmatprep.subr.bf16.mxu0 %v4396_v17 }
  0x7b   : > { %3763 = vmatmul.mubr.bf16.vlgmr.msra.gmra.mxu0 %v4381_v9 }
  0x7c   : > { %3766 = vmatprep.mubr.bf16.mxu0 %v4382_v10  ;;  %3811 = vmatpush3.bf16.msra.mxu0 %v4396_v17 }
  0x7d   : > { %3812 = vmatprep.subr.bf16.mxu0 %v4397_v18 }
  0x80   : > { %3813 = vmatpush3.bf16.msra.mxu0 %v4397_v18 }
  0x81   : > { %3814 = vmatprep.subr.bf16.mxu0 %v4398_v50 }
  0x83   : > { %3767 = vmatmul.mubr.bf16.gmra.mxu0 %v4383_v11 }
  0x84   : > { %3770 = vmatprep.mubr.bf16.mxu0 %v4384_v12  ;;  %3815 = vmatpush3.bf16.msra.mxu0 %v4398_v50 }
  0x85   : > { %3816 = vmatprep.subr.bf16.mxu0 %v4399_v51 }
  0x88   : > { %3817 = vmatpush3.bf16.msra.mxu0 %v4399_v51 }
  0x89   : > { %3818 = vmatprep.subr.bf16.mxu0 %v4400_v52 }
  0x8b   : > { %3771 = vmatmul.mubr.bf16.gmra.mxu0 %v4385_v13 }
  0x8c   : > { %3774 = vmatprep.mubr.bf16.mxu0 %v4386_v14  ;;  %3819 = vmatpush3.bf16.msra.mxu0 %v4400_v52 }
  0x8d   : > { %3820 = vmatprep.subr.bf16.mxu0 %v4401_v53 }
  0x90   : > { %3821 = vmatpush3.bf16.msra.mxu0 %v4401_v53 }
  0x91   : > { %3822 = vmatprep.subr.bf16.mxu0 %v4402_v54 }
  0x93   : > { %3775 = vmatmul.mubr.bf16.gmra.mxu0 %v4387_v15 }
  0x94   : > { %3823 = vmatpush3.bf16.msra.mxu0 %v4402_v54 }
  0x95   : > { %3824 = vmatprep.subr.bf16.mxu0 %v4403_v55 }
  0x98   : > { %3825 = vmatpush3.bf16.msra.mxu0 %v4403_v55 }
 0x13b   : > { %v3764_v19 = vpop.f32.mrf.mxu0 }
 0x13d   : > { %v397_v20 = vpop.f32.mrf.mxu0 }
 0x13f   : > { %v3765_v21 = vpop.f32.mrf.mxu0 }
 0x140   : > { %v461_v41 = vpack.c.bf16 %v3765_v21, %v3764_v19 }
 0x141   : > { %v400_v22 = vpop.f32.mrf.mxu0 }
 0x142   : > { %v460_v42 = vpack.c.bf16 %v400_v22, %v397_v20 }
 0x143   : > { %v3768_v23 = vpop.f32.mrf.mxu0 }
 0x145   : > { %v413_v24 = vpop.f32.mrf.mxu0 }
 0x147   : > { %v3769_v25 = vpop.f32.mrf.mxu0 }
 0x148   : > { %v463_v39 = vpack.c.bf16 %v3769_v25, %v3768_v23 }
 0x149   : > { %v416_v26 = vpop.f32.mrf.mxu0 }
 0x14a   : > { %v462_v40 = vpack.c.bf16 %v416_v26, %v413_v24 }
 0x14b   : > { %v3772_v27 = vpop.f32.mrf.mxu0 }
 0x14d   : > { %v429_v28 = vpop.f32.mrf.mxu0 }
 0x14f   : > { %v3773_v29 = vpop.f32.mrf.mxu0 }
 0x150   : > { %v465_v37 = vpack.c.bf16 %v3773_v29, %v3772_v27 }
 0x151   : > { %v432_v30 = vpop.f32.mrf.mxu0 }
 0x152   : > { %v464_v38 = vpack.c.bf16 %v432_v30, %v429_v28 }
 0x153   : > { %v3776_v31 = vpop.f32.mrf.mxu0 }
 0x155   : > { %v445_v32 = vpop.f32.mrf.mxu0 }
 0x157   : > { %v3777_v33 = vpop.f32.mrf.mxu0 }
 0x158   : > { %v467_v34 = vpack.c.bf16 %v3777_v33, %v3776_v31 }
 0x159   : > { %v448_v35 = vpop.f32.mrf.mxu0 }
 0x15a   : > { %v466_v36 = vpack.c.bf16 %v448_v35, %v445_v32  ;;  %3778 = vmatprep.subr.bf16.mxu1 %v467_v34 }
 0x15b   : > { %3779 = vmatpush3.bf16.msra.mxu1 %v467_v34 }
 0x15c   : > { %3780 = vmatprep.subr.bf16.mxu1 %v466_v36 }
 0x15f   : > { %3781 = vmatpush3.bf16.msra.mxu1 %v466_v36 }
 0x160   : > { %3782 = vmatprep.subr.bf16.mxu1 %v465_v37 }
 0x163   : > { %3783 = vmatpush3.bf16.msra.mxu1 %v465_v37 }
 0x164   : > { %3784 = vmatprep.subr.bf16.mxu1 %v464_v38 }
 0x167   : > { %3785 = vmatpush3.bf16.msra.mxu1 %v464_v38 }
 0x168   : > { %3786 = vmatprep.subr.bf16.mxu1 %v463_v39 }
 0x16b   : > { %3787 = vmatpush3.bf16.msra.mxu1 %v463_v39 }
 0x16c   : > { %3788 = vmatprep.subr.bf16.mxu1 %v462_v40 }
 0x16f   : > { %3789 = vmatpush3.bf16.msra.mxu1 %v462_v40 }
 0x170   : > { %3790 = vmatprep.subr.bf16.mxu1 %v461_v41 }
 0x173   : > { %3791 = vmatpush3.bf16.msra.mxu1 %v461_v41 }
 0x174   : > { %3792 = vmatprep.subr.bf16.mxu1 %v460_v42 }
 0x177   : > { %3793 = vmatpush3.bf16.msra.mxu1 %v460_v42 }
 0x17a   : > { %3795 = vmatmul.mubr.bf16.vlgmr.msra.gmra.mxu1 %v4995_v43 }
 0x17b   : > { %3798 = vmatprep.mubr.bf16.mxu1 %v4998_v44 }
 0x182   : > { %3799 = vmatmul.mubr.bf16.gmra.mxu1 %v5003_v45 }
 0x183   : > { %3802 = vmatprep.mubr.bf16.mxu1 %v5006_v46 }
 0x18a   : > { %3803 = vmatmul.mubr.bf16.gmra.mxu1 %v5011_v47 }
 0x18b   : > { %3806 = vmatprep.mubr.bf16.mxu1 %v5014_v48 }
 0x192   : > { %3807 = vmatmul.mubr.bf16.gmra.mxu1 %v5019_v49 }
 0x193   : > { %3858 = vmatprep.mubr.bf16.mxu1 %v4991_v16 }
 0x23a   : > { %v3796_v60 = vpop.f32.mrf.mxu1 }
 0x23b   : > { %v563_v2 = vadd.f32 %v3796_v60, %v471_v61 }
 0x23c   : > { %v554_v62 = vpop.f32.mrf.mxu1 }
 0x23d   : > { %v555_v63 = vadd.f32 %v554_v62, %v471_v61 }
 0x23e   : > { %v3797_v0 = vpop.f32.mrf.mxu1 }
 0x23f   : > { %v566_v1 = vadd.f32 %v3797_v0, %v471_v61  ;;  %4509 = vtanh.f32 %v555_v63  ;;  %v4404_v0 = vld [vmem:[#allocation2 + $0xb8] sm:$0xff]  }
 0x240   : > { %v557_v3 = vpop.f32.mrf.mxu1  ;;  %3874 = vmatprep.subr.bf16.mxu0 %v4404_v0 }
 0x241   : > { %v558_v4 = vadd.f32 %v557_v3, %v471_v61  ;;  %4511 = vtanh.f32 %v566_v1  ;;  %v4405_v1 = vld [vmem:[#allocation2 + $0xb0] sm:$0xff]  }
 0x242   : > { %v3800_v5 = vpop.f32.mrf.mxu1 }
 0x243   : > { %4513 = vtanh.f32 %v558_v4  ;;  %v579_v10 = vadd.f32 %v3800_v5, %v471_v61 }
 0x244   : > { %4515 = vtanh.f32 %v563_v2  ;;  %v570_v6 = vpop.f32.mrf.mxu1 }
 0x245   : > { %v571_v7 = vadd.f32 %v570_v6, %v471_v61 }
 0x246   : > { %v3801_v8 = vpop.f32.mrf.mxu1 }
 0x247   : > { %v582_v9 = vadd.f32 %v3801_v8, %v471_v61  ;;  %4517 = vtanh.f32 %v571_v7 }
 0x248   : > { %v573_v11 = vpop.f32.mrf.mxu1 }
 0x249   : > { %v574_v12 = vadd.f32 %v573_v11, %v471_v61  ;;  %4519 = vtanh.f32 %v582_v9 }
 0x24a   : > { %v3804_v13 = vpop.f32.mrf.mxu1 }
 0x24b   : > { %4521 = vtanh.f32 %v574_v12  ;;  %v595_v22 = vadd.f32 %v3804_v13, %v471_v61 }
 0x24c   : > { %4523 = vtanh.f32 %v579_v10  ;;  %v586_v14 = vpop.f32.mrf.mxu1  ;;  %v4510_v17 = vpop.eup %4509 }
 0x24d   : > { %v587_v15 = vadd.f32 %v586_v14, %v471_v61 }
 0x24e   : > { %v3805_v18 = vpop.f32.mrf.mxu1  ;;  %v4512_v19 = vpop.eup %4511 }
 0x24f   : > { %v598_v20 = vadd.f32 %v3805_v18, %v471_v61  ;;  %4525 = vtanh.f32 %v587_v15 }
 0x250   : > { %v4514_v21 = vpop.eup %4513  ;;  %v589_v23 = vpop.f32.mrf.mxu1 }
 0x251   : > { %v4516_v24 = vpop.eup %4515  ;;  %v590_v25 = vadd.f32 %v589_v23, %v471_v61  ;;  %v633_v26 = vpack.c.bf16 %v4514_v21, %v4510_v17  ;;  %4527 = vtanh.f32 %v598_v20 }
 0x252   : > { %v3808_v27 = vpop.f32.mrf.mxu1  ;;  %v634_v28 = vpack.c.bf16 %v4512_v19, %v4516_v24 }
 0x253   : > { %4529 = vtanh.f32 %v590_v25  ;;  %3826 = vmatprep.mubr.bf16.mxu0 %v633_v26  ;;  %v611_v36 = vadd.f32 %v3808_v27, %v471_v61  ;;  %v4406_v27 = vld [vmem:[#allocation2 + $0xa8] sm:$0xff]  }
 0x254   : > { %4531 = vtanh.f32 %v595_v22  ;;  %v602_v29 = vpop.f32.mrf.mxu1  ;;  %3827 = vmatmul.mubr.bf16.vlgmr.msra.gmra.mxu0 %v634_v28  ;;  %v4518_v31 = vpop.eup %4517  ;;  %v4407_v28 = vld [vmem:[#allocation2 + $0xa0] sm:$0xff]  }
 0x255   : > { %v603_v30 = vadd.f32 %v602_v29, %v471_v61  ;;  %3875 = vmatpush3.bf16.msra.mxu0 %v4404_v0  ;;  %v4408_v29 = vld [vmem:[#allocation2 + $0x98] sm:$0xff]  }
 0x256   : > { %v3809_v32 = vpop.f32.mrf.mxu1  ;;  %v4520_v33 = vpop.eup %4519  ;;  %3876 = vmatprep.subr.bf16.mxu0 %v4405_v1 }
 0x257   : > { %v614_v34 = vadd.f32 %v3809_v32, %v471_v61  ;;  %4533 = vtanh.f32 %v603_v30  ;;  %v4409_v30 = vld [vmem:[#allocation2 + $0x90] sm:$0xff]   ;;  %v4411_v32 = vld [vmem:[#allocation2 + $0x80] sm:$0xff]  }
 0x258   : > { %v4522_v35 = vpop.eup %4521  ;;  %v605_v37 = vpop.f32.mrf.mxu1 }
 0x259   : > { %v4524_v38 = vpop.eup %4523  ;;  %v606_v39 = vadd.f32 %v605_v37, %v471_v61  ;;  %v635_v40 = vpack.c.bf16 %v4522_v35, %v4518_v31  ;;  %4535 = vtanh.f32 %v614_v34  ;;  %3877 = vmatpush3.bf16.msra.mxu0 %v4405_v1  ;;  %v4410_v31 = vld [vmem:[#allocation2 + $0x88] sm:$0xff]  }
 0x25a   : > { %v636_v41 = vpack.c.bf16 %v4520_v33, %v4524_v38  ;;  %3878 = vmatprep.subr.bf16.mxu0 %v4406_v27  ;;  %v4412_v33 = vld [vmem:[#allocation2 + $0xf8] sm:$0xff]  }
 0x25b   : > { %4537 = vtanh.f32 %v606_v39  ;;  %3830 = vmatprep.mubr.bf16.mxu0 %v635_v40 }
 0x25c   : > { %4539 = vtanh.f32 %v611_v36  ;;  %3831 = vmatmul.mubr.bf16.gmra.mxu0 %v636_v41  ;;  %v4526_v42 = vpop.eup %4525 }
 0x25d   : > { %3879 = vmatpush3.bf16.msra.mxu0 %v4406_v27 }
 0x25e   : > { %v4528_v50 = vpop.eup %4527  ;;  %3880 = vmatprep.subr.bf16.mxu0 %v4407_v28 }
 0x260   : > { %v4530_v51 = vpop.eup %4529 }
 0x261   : > { %v4532_v52 = vpop.eup %4531  ;;  %v637_v53 = vpack.c.bf16 %v4530_v51, %v4526_v42  ;;  %3881 = vmatpush3.bf16.msra.mxu0 %v4407_v28  ;;  %v4415_v28 = vld [vmem:[#allocation2 + $0xe0] sm:$0xff]  }
 0x262   : > { %v638_v54 = vpack.c.bf16 %v4528_v50, %v4532_v52  ;;  %3882 = vmatprep.subr.bf16.mxu0 %v4408_v29 }
 0x263   : > { %3834 = vmatprep.mubr.bf16.mxu0 %v637_v53 }
 0x264   : > { %3835 = vmatmul.mubr.bf16.gmra.mxu0 %v638_v54  ;;  %v4534_v55 = vpop.eup %4533 }
 0x265   : > { %3883 = vmatpush3.bf16.msra.mxu0 %v4408_v29 }
 0x266   : > { %v4536_v56 = vpop.eup %4535  ;;  %3884 = vmatprep.subr.bf16.mxu0 %v4409_v30 }
 0x268   : > { %v4538_v60 = vpop.eup %4537 }
 0x269   : > { %v4540_v62 = vpop.eup %4539  ;;  %v639_v61 = vpack.c.bf16 %v4538_v60, %v4534_v55  ;;  %3885 = vmatpush3.bf16.msra.mxu0 %v4409_v30  ;;  %v4416_v30 = vld [vmem:[#allocation2 + $0xd8] sm:$0xff]  }
 0x26a   : > { %v640_v63 = vpack.c.bf16 %v4536_v56, %v4540_v62  ;;  %3886 = vmatprep.subr.bf16.mxu0 %v4410_v31 }
 0x26b   : > { %3838 = vmatprep.mubr.bf16.mxu0 %v639_v61 }
 0x26c   : > { %3839 = vmatmul.mubr.bf16.gmra.mxu0 %v640_v63 }
 0x26d   : > { %3887 = vmatpush3.bf16.msra.mxu0 %v4410_v31 }
 0x26e   : > { %3888 = vmatprep.subr.bf16.mxu0 %v4411_v32 }
 0x271   : > { %3889 = vmatpush3.bf16.msra.mxu0 %v4411_v32 }
 0x272   : > { %3938 = vmatprep.subr.bf16.mxu0 %v4412_v33 }
 0x314   : > { %v3828_v2 = vpop.f32.mrf.mxu0 }
 0x316   : > { %v740_v3 = vpop.f32.mrf.mxu0 }
 0x318   : > { %v3829_v4 = vpop.f32.mrf.mxu0 }
 0x319   : > { %v804_v25 = vpack.c.bf16 %v3829_v4, %v3828_v2 }
 0x31a   : > { %v743_v5 = vpop.f32.mrf.mxu0 }
 0x31b   : > { %v803_v26 = vpack.c.bf16 %v743_v5, %v740_v3 }
 0x31c   : > { %v3832_v6 = vpop.f32.mrf.mxu0 }
 0x31e   : > { %v756_v7 = vpop.f32.mrf.mxu0 }
 0x320   : > { %v3833_v8 = vpop.f32.mrf.mxu0 }
 0x321   : > { %v806_v23 = vpack.c.bf16 %v3833_v8, %v3832_v6 }
 0x322   : > { %v759_v9 = vpop.f32.mrf.mxu0 }
 0x323   : > { %v805_v24 = vpack.c.bf16 %v759_v9, %v756_v7 }
 0x324   : > { %v3836_v10 = vpop.f32.mrf.mxu0 }
 0x326   : > { %v772_v11 = vpop.f32.mrf.mxu0 }
 0x328   : > { %v3837_v12 = vpop.f32.mrf.mxu0 }
 0x329   : > { %v808_v21 = vpack.c.bf16 %v3837_v12, %v3836_v10  ;;  %v4413_v12 = vld [vmem:[#allocation2 + $0xf0] sm:$0xff]  }
 0x32a   : > { %v775_v13 = vpop.f32.mrf.mxu0 }
 0x32b   : > { %v807_v22 = vpack.c.bf16 %v775_v13, %v772_v11 }
 0x32c   : > { %v3840_v14 = vpop.f32.mrf.mxu0 }
 0x32e   : > { %v788_v15 = vpop.f32.mrf.mxu0 }
 0x330   : > { %v3841_v17 = vpop.f32.mrf.mxu0 }
 0x331   : > { %v810_v18 = vpack.c.bf16 %v3841_v17, %v3840_v14 }
 0x332   : > { %v791_v19 = vpop.f32.mrf.mxu0 }
 0x333   : > { %v809_v20 = vpack.c.bf16 %v791_v19, %v788_v15  ;;  %3842 = vmatprep.subr.bf16.mxu1 %v810_v18 }
 0x334   : > { %3843 = vmatpush3.bf16.msra.mxu1 %v810_v18  ;;  %v4414_v18 = vld [vmem:[#allocation2 + $0xe8] sm:$0xff]  }
 0x335   : > { %3844 = vmatprep.subr.bf16.mxu1 %v809_v20 }
 0x338   : > { %3845 = vmatpush3.bf16.msra.mxu1 %v809_v20 }
 0x339   : > { %3846 = vmatprep.subr.bf16.mxu1 %v808_v21 }
 0x33c   : > { %3847 = vmatpush3.bf16.msra.mxu1 %v808_v21 }
 0x33d   : > { %3848 = vmatprep.subr.bf16.mxu1 %v807_v22 }
 0x340   : > { %3849 = vmatpush3.bf16.msra.mxu1 %v807_v22 }
 0x341   : > { %3850 = vmatprep.subr.bf16.mxu1 %v806_v23 }
 0x344   : > { %3851 = vmatpush3.bf16.msra.mxu1 %v806_v23 }
 0x345   : > { %3852 = vmatprep.subr.bf16.mxu1 %v805_v24 }
 0x348   : > { %3853 = vmatpush3.bf16.msra.mxu1 %v805_v24 }
 0x349   : > { %3854 = vmatprep.subr.bf16.mxu1 %v804_v25 }
 0x34c   : > { %3855 = vmatpush3.bf16.msra.mxu1 %v804_v25 }
 0x34d   : > { %3856 = vmatprep.subr.bf16.mxu1 %v803_v26 }
 0x350   : > { %3857 = vmatpush3.bf16.msra.mxu1 %v803_v26 }
 0x353   : > { %3859 = vmatmul.mubr.bf16.vlgmr.msra.gmra.mxu1 %v4995_v43 }
 0x354   : > { %3862 = vmatprep.mubr.bf16.mxu1 %v4998_v44 }
 0x35b   : > { %3863 = vmatmul.mubr.bf16.gmra.mxu1 %v5003_v45 }
 0x35c   : > { %3866 = vmatprep.mubr.bf16.mxu1 %v5006_v46 }
 0x363   : > { %3867 = vmatmul.mubr.bf16.gmra.mxu1 %v5011_v47 }
 0x364   : > { %3870 = vmatprep.mubr.bf16.mxu1 %v5014_v48 }
 0x36b   : > { %3871 = vmatmul.mubr.bf16.gmra.mxu1 %v5019_v49 }
 0x36c   : > { %3922 = vmatprep.mubr.bf16.mxu1 %v4991_v16  ;;  %v813_v16 = vsub.s32 1, %v5023_v57 }
 0x36e   : > { %v814_v35 = vrot.slane %v5026_v59, %v813_v16 }
 0x413   : > { %v3860_v34 = vpop.f32.mrf.mxu1 }
 0x414   : > { %v858_v40 = vadd.f32 %v3860_v34, %v814_v35 }
 0x415   : > { %v849_v36 = vpop.f32.mrf.mxu1 }
 0x416   : > { %v850_v37 = vadd.f32 %v849_v36, %v814_v35  ;;  %v4417_v36 = vld [vmem:[#allocation2 + $0xd0] sm:$0xff]  }
 0x417   : > { %v3861_v38 = vpop.f32.mrf.mxu1 }
 0x418   : > { %v861_v39 = vadd.f32 %v3861_v38, %v814_v35  ;;  %4541 = vtanh.f32 %v850_v37  ;;  %v4418_v38 = vld [vmem:[#allocation2 + $0xc8] sm:$0xff]  }
 0x419   : > { %v852_v41 = vpop.f32.mrf.mxu1 }
 0x41a   : > { %v853_v42 = vadd.f32 %v852_v41, %v814_v35  ;;  %4543 = vtanh.f32 %v861_v39 }
 0x41b   : > { %v3864_v50 = vpop.f32.mrf.mxu1 }
 0x41c   : > { %4545 = vtanh.f32 %v853_v42  ;;  %v874_v55 = vadd.f32 %v3864_v50, %v814_v35  ;;  %v4420_v50 = vld [vmem:[%s4976_s29 + $0x140] sm:$0xff]  }
 0x41d   : > { %4547 = vtanh.f32 %v858_v40  ;;  %v865_v51 = vpop.f32.mrf.mxu1 }
 0x41e   : > { %v866_v52 = vadd.f32 %v865_v51, %v814_v35 }
 0x41f   : > { %v3865_v53 = vpop.f32.mrf.mxu1 }
 0x420   : > { %v877_v54 = vadd.f32 %v3865_v53, %v814_v35  ;;  %4549 = vtanh.f32 %v866_v52  ;;  %v4419_v52 = vld [vmem:[#allocation2 + $0xc0] sm:$0xff]   ;;  %v4421_v53 = vld [vmem:[%s4976_s29 + $0x148] sm:$0xff]  }
 0x421   : > { %v868_v56 = vpop.f32.mrf.mxu1 }
 0x422   : > { %v869_v60 = vadd.f32 %v868_v56, %v814_v35  ;;  %4551 = vtanh.f32 %v877_v54  ;;  %v4422_v54 = vld [vmem:[%s4976_s29 + $0x150] sm:$0xff]   ;;  %v4424_v56 = vld [vmem:[%s4976_s29 + $0x160] sm:$0xff]  }
 0x423   : > { %v3868_v62 = vpop.f32.mrf.mxu1 }
 0x424   : > { %4553 = vtanh.f32 %v869_v60  ;;  %v890_v5 = vadd.f32 %v3868_v62, %v814_v35  ;;  %v4425_v60 = vld [vmem:[%s4976_s29 + $0x168] sm:$0xff]   ;;  %v4426_v62 = vld [vmem:[%s4976_s29 + $0x170] sm:$0xff]  }
 0x425   : > { %4555 = vtanh.f32 %v874_v55  ;;  %v881_v61 = vpop.f32.mrf.mxu1  ;;  %v4542_v0 = vpop.eup %4541  ;;  %v4423_v55 = vld [vmem:[%s4976_s29 + $0x158] sm:$0xff]  }
 0x426   : > { %v882_v63 = vadd.f32 %v881_v61, %v814_v35  ;;  %v4427_v61 = vld [vmem:[%s4976_s29 + $0x178] sm:$0xff]  }
 0x427   : > { %v3869_v1 = vpop.f32.mrf.mxu1  ;;  %v4544_v2 = vpop.eup %4543 }
 0x428   : > { %v893_v3 = vadd.f32 %v3869_v1, %v814_v35  ;;  %4557 = vtanh.f32 %v882_v63 }
 0x429   : > { %v4546_v4 = vpop.eup %4545  ;;  %v884_v6 = vpop.f32.mrf.mxu1 }
 0x42a   : > { %v4548_v7 = vpop.eup %4547  ;;  %v885_v8 = vadd.f32 %v884_v6, %v814_v35  ;;  %v928_v9 = vpack.c.bf16 %v4546_v4, %v4542_v0  ;;  %4559 = vtanh.f32 %v893_v3 }
 0x42b   : > { %v3872_v10 = vpop.f32.mrf.mxu1  ;;  %v929_v11 = vpack.c.bf16 %v4544_v2, %v4548_v7 }
 0x42c   : > { %4561 = vtanh.f32 %v885_v8  ;;  %3890 = vmatprep.mubr.bf16.mxu0 %v928_v9  ;;  %v906_v22 = vadd.f32 %v3872_v10, %v814_v35 }
 0x42d   : > { %4563 = vtanh.f32 %v890_v5  ;;  %v897_v13 = vpop.f32.mrf.mxu1  ;;  %3891 = vmatmul.mubr.bf16.vlgmr.msra.gmra.mxu0 %v929_v11  ;;  %v4550_v15 = vpop.eup %4549 }
 0x42e   : > { %v898_v14 = vadd.f32 %v897_v13, %v814_v35  ;;  %3939 = vmatpush3.bf16.msra.mxu0 %v4412_v33 }
 0x42f   : > { %v3873_v17 = vpop.f32.mrf.mxu1  ;;  %3940 = vmatprep.subr.bf16.mxu0 %v4413_v12  ;;  %v4552_v19 = vpop.eup %4551 }
 0x430   : > { %v909_v20 = vadd.f32 %v3873_v17, %v814_v35  ;;  %4565 = vtanh.f32 %v898_v14 }
 0x431   : > { %v4554_v21 = vpop.eup %4553  ;;  %v900_v23 = vpop.f32.mrf.mxu1 }
 0x432   : > { %v4556_v24 = vpop.eup %4555  ;;  %v901_v25 = vadd.f32 %v900_v23, %v814_v35  ;;  %3941 = vmatpush3.bf16.msra.mxu0 %v4413_v12  ;;  %v930_v26 = vpack.c.bf16 %v4554_v21, %v4550_v15  ;;  %4567 = vtanh.f32 %v909_v20 }
 0x433   : > { %v931_v27 = vpack.c.bf16 %v4552_v19, %v4556_v24  ;;  %3942 = vmatprep.subr.bf16.mxu0 %v4414_v18 }
 0x434   : > { %4569 = vtanh.f32 %v901_v25  ;;  %3894 = vmatprep.mubr.bf16.mxu0 %v930_v26 }
 0x435   : > { %4571 = vtanh.f32 %v906_v22  ;;  %3895 = vmatmul.mubr.bf16.gmra.mxu0 %v931_v27  ;;  %v4558_v29 = vpop.eup %4557 }
 0x436   : > { %3943 = vmatpush3.bf16.msra.mxu0 %v4414_v18 }
 0x437   : > { %3944 = vmatprep.subr.bf16.mxu0 %v4415_v28  ;;  %v4560_v31 = vpop.eup %4559 }
 0x439   : > { %v4562_v32 = vpop.eup %4561 }
 0x43a   : > { %v4564_v33 = vpop.eup %4563  ;;  %3945 = vmatpush3.bf16.msra.mxu0 %v4415_v28  ;;  %v932_v34 = vpack.c.bf16 %v4562_v32, %v4558_v29 }
 0x43b   : > { %v933_v35 = vpack.c.bf16 %v4560_v31, %v4564_v33  ;;  %3946 = vmatprep.subr.bf16.mxu0 %v4416_v30 }
 0x43c   : > { %3898 = vmatprep.mubr.bf16.mxu0 %v932_v34 }
 0x43d   : > { %3899 = vmatmul.mubr.bf16.gmra.mxu0 %v933_v35  ;;  %v4566_v37 = vpop.eup %4565 }
 0x43e   : > { %3947 = vmatpush3.bf16.msra.mxu0 %v4416_v30 }
 0x43f   : > { %3948 = vmatprep.subr.bf16.mxu0 %v4417_v36  ;;  %v4568_v39 = vpop.eup %4567 }
 0x441   : > { %v4570_v40 = vpop.eup %4569 }
 0x442   : > { %v4572_v41 = vpop.eup %4571  ;;  %3949 = vmatpush3.bf16.msra.mxu0 %v4417_v36  ;;  %v934_v42 = vpack.c.bf16 %v4570_v40, %v4566_v37 }
 0x443   : > { %v935_v51 = vpack.c.bf16 %v4568_v39, %v4572_v41  ;;  %3950 = vmatprep.subr.bf16.mxu0 %v4418_v38 }
 0x444   : > { %3902 = vmatprep.mubr.bf16.mxu0 %v934_v42 }
 0x445   : > { %3903 = vmatmul.mubr.bf16.gmra.mxu0 %v935_v51 }
 0x446   : > { %3951 = vmatpush3.bf16.msra.mxu0 %v4418_v38  ;;  %3954 = vmatprep.mubr.bf16.mxu0 %v4420_v50 }
 0x447   : > { %3952 = vmatprep.subr.bf16.mxu0 %v4419_v52 }
 0x44a   : > { %3953 = vmatpush3.bf16.msra.mxu0 %v4419_v52  ;;  %v5068_v52 = vld [vmem:[%s4976_s29 + $0x58] sm:$0xff]  }
 0x44d   : > { %3955 = vmatmul.mubr.bf16.vlgmr.msra.gmra.mxu0 %v4421_v53  ;;  %v5071_v53 = vld [vmem:[%s4976_s29 + $0x60] sm:$0xff]  }
 0x44e   : > { %3958 = vmatprep.mubr.bf16.mxu0 %v4422_v54  ;;  %v5079_v54 = vld [vmem:[%s4976_s29 + $0x70] sm:$0xff]  }
 0x455   : > { %3959 = vmatmul.mubr.bf16.gmra.mxu0 %v4423_v55  ;;  %v5084_v55 = vld [vmem:[%s4976_s29 + $0x78] sm:$0xff]  }
 0x456   : > { %3962 = vmatprep.mubr.bf16.mxu0 %v4424_v56  ;;  %v4436_v56 = vld [vmem:[#allocation2 + $0x138] sm:$0xff]  }
 0x457   : > { %4002 = vmatprep.subr.bf16.mxu0 %v4436_v56 }
 0x458   : > { %4003 = vmatpush3.bf16.msra.mxu0 %v4436_v56 }
 0x45d   : > { %3963 = vmatmul.mubr.bf16.gmra.mxu0 %v4425_v60  ;;  %v4437_v60 = vld [vmem:[#allocation2 + $0x130] sm:$0xff]  }
 0x45e   : > { %3966 = vmatprep.mubr.bf16.mxu0 %v4426_v62  ;;  %4004 = vmatprep.subr.bf16.mxu0 %v4437_v60  ;;  %v4438_v62 = vld [vmem:[#allocation2 + $0x128] sm:$0xff]  }
 0x45f   : > { %4005 = vmatpush3.bf16.msra.mxu0 %v4437_v60 }
 0x460   : > { %4006 = vmatprep.subr.bf16.mxu0 %v4438_v62 }
 0x463   : > { %4007 = vmatpush3.bf16.msra.mxu0 %v4438_v62 }
 0x465   : > { %3967 = vmatmul.mubr.bf16.gmra.mxu0 %v4427_v61  ;;  %v4439_v61 = vld [vmem:[#allocation2 + $0x120] sm:$0xff]  }
 0x466   : > { %4008 = vmatprep.subr.bf16.mxu0 %v4439_v61 }
 0x467   : > { %4009 = vmatpush3.bf16.msra.mxu0 %v4439_v61 }
 0x4ed   : > { %v3892_v63 = vpop.f32.mrf.mxu0 }
 0x4ef   : > { %v1035_v0 = vpop.f32.mrf.mxu0 }
 0x4f1   : > { %v3893_v1 = vpop.f32.mrf.mxu0 }
 0x4f2   : > { %v1099_v32 = vpack.c.bf16 %v3893_v1, %v3892_v63  ;;  %v4440_v63 = vld [vmem:[#allocation2 + $0x118] sm:$0xff]   ;;  %v4442_v1 = vld [vmem:[#allocation2 + $0x108] sm:$0xff]  }
 0x4f3   : > { %v1038_v2 = vpop.f32.mrf.mxu0  ;;  %4010 = vmatprep.subr.bf16.mxu0 %v4440_v63 }
 0x4f4   : > { %v1098_v35 = vpack.c.bf16 %v1038_v2, %v1035_v0  ;;  %4011 = vmatpush3.bf16.msra.mxu0 %v4440_v63  ;;  %v4441_v0 = vld [vmem:[#allocation2 + $0x110] sm:$0xff]   ;;  %v4443_v2 = vld [vmem:[#allocation2 + $0x100] sm:$0xff]  }
 0x4f5   : > { %v3896_v3 = vpop.f32.mrf.mxu0  ;;  %4012 = vmatprep.subr.bf16.mxu0 %v4441_v0 }
 0x4f7   : > { %v1051_v4 = vpop.f32.mrf.mxu0 }
 0x4f8   : > { %4013 = vmatpush3.bf16.msra.mxu0 %v4441_v0 }
 0x4f9   : > { %v3897_v5 = vpop.f32.mrf.mxu0  ;;  %4014 = vmatprep.subr.bf16.mxu0 %v4442_v1 }
 0x4fa   : > { %v1101_v26 = vpack.c.bf16 %v3897_v5, %v3896_v3 }
 0x4fb   : > { %v1054_v6 = vpop.f32.mrf.mxu0 }
 0x4fc   : > { %v1100_v29 = vpack.c.bf16 %v1054_v6, %v1051_v4  ;;  %4015 = vmatpush3.bf16.msra.mxu0 %v4442_v1 }
 0x4fd   : > { %v3900_v7 = vpop.f32.mrf.mxu0  ;;  %4016 = vmatprep.subr.bf16.mxu0 %v4443_v2 }
 0x4ff   : > { %v1067_v8 = vpop.f32.mrf.mxu0 }
 0x500   : > { %4017 = vmatpush3.bf16.msra.mxu0 %v4443_v2 }
 0x501   : > { %v3901_v9 = vpop.f32.mrf.mxu0 }
 0x502   : > { %v1103_v20 = vpack.c.bf16 %v3901_v9, %v3900_v7 }
 0x503   : > { %v1070_v10 = vpop.f32.mrf.mxu0 }
 0x504   : > { %v1102_v23 = vpack.c.bf16 %v1070_v10, %v1067_v8 }
 0x505   : > { %v3904_v11 = vpop.f32.mrf.mxu0 }
 0x507   : > { %v1083_v12 = vpop.f32.mrf.mxu0 }
 0x509   : > { %v3905_v13 = vpop.f32.mrf.mxu0 }
 0x50a   : > { %v1105_v14 = vpack.c.bf16 %v3905_v13, %v3904_v11 }
 0x50b   : > { %v1086_v15 = vpop.f32.mrf.mxu0 }
 0x50c   : > { %v1104_v17 = vpack.c.bf16 %v1086_v15, %v1083_v12  ;;  %3906 = vmatprep.subr.bf16.mxu1 %v1105_v14 }
 0x50d   : > { %3907 = vmatpush3.bf16.msra.mxu1 %v1105_v14  ;;  %v3956_v18 = vpop.f32.mrf.mxu0 }
 0x50e   : > { %3908 = vmatprep.subr.bf16.mxu1 %v1104_v17 }
 0x50f   : > { %v1386_v19 = vpop.f32.mrf.mxu0 }
 0x511   : > { %3909 = vmatpush3.bf16.msra.mxu1 %v1104_v17  ;;  %v3957_v21 = vpop.f32.mrf.mxu0 }
 0x512   : > { %3910 = vmatprep.subr.bf16.mxu1 %v1103_v20 }
 0x513   : > { %v1389_v22 = vpop.f32.mrf.mxu0 }
 0x515   : > { %3911 = vmatpush3.bf16.msra.mxu1 %v1103_v20  ;;  %v3960_v24 = vpop.f32.mrf.mxu0 }
 0x516   : > { %3912 = vmatprep.subr.bf16.mxu1 %v1102_v23 }
 0x517   : > { %v1402_v25 = vpop.f32.mrf.mxu0 }
 0x519   : > { %3913 = vmatpush3.bf16.msra.mxu1 %v1102_v23  ;;  %v3961_v27 = vpop.f32.mrf.mxu0 }
 0x51a   : > { %3914 = vmatprep.subr.bf16.mxu1 %v1101_v26  ;;  %v1452_v51 = vpack.c.bf16 %v3961_v27, %v3960_v24 }
 0x51b   : > { %v1405_v28 = vpop.f32.mrf.mxu0 }
 0x51d   : > { %3915 = vmatpush3.bf16.msra.mxu1 %v1101_v26  ;;  %v3964_v30 = vpop.f32.mrf.mxu0 }
 0x51e   : > { %3916 = vmatprep.subr.bf16.mxu1 %v1100_v29 }
 0x51f   : > { %v1418_v31 = vpop.f32.mrf.mxu0 }
 0x521   : > { %3917 = vmatpush3.bf16.msra.mxu1 %v1100_v29  ;;  %v3965_v33 = vpop.f32.mrf.mxu0 }
 0x522   : > { %3918 = vmatprep.subr.bf16.mxu1 %v1099_v32  ;;  %v1454_v42 = vpack.c.bf16 %v3965_v33, %v3964_v30 }
 0x523   : > { %v1421_v34 = vpop.f32.mrf.mxu0 }
 0x524   : > { %v1453_v50 = vpack.c.bf16 %v1421_v34, %v1418_v31 }
 0x525   : > { %3919 = vmatpush3.bf16.msra.mxu1 %v1099_v32  ;;  %v3968_v36 = vpop.f32.mrf.mxu0 }
 0x526   : > { %3920 = vmatprep.subr.bf16.mxu1 %v1098_v35 }
 0x527   : > { %v1434_v37 = vpop.f32.mrf.mxu0 }
 0x529   : > { %3921 = vmatpush3.bf16.msra.mxu1 %v1098_v35  ;;  %v3969_v38 = vpop.f32.mrf.mxu0 }
 0x52a   : > { %v1456_v39 = vpack.c.bf16 %v3969_v38, %v3968_v36 }
 0x52b   : > { %v1437_v40 = vpop.f32.mrf.mxu0 }
 0x52c   : > { %v1455_v41 = vpack.c.bf16 %v1437_v40, %v1434_v37  ;;  %3923 = vmatmul.mubr.bf16.vlgmr.msra.gmra.mxu1 %v4995_v43  ;;  %3970 = vmatprep.subr.bf16.mxu1 %v1456_v39  ;;  %v1451_v43 = vpack.c.bf16 %v1405_v28, %v1402_v25 }
 0x52d   : > { %3971 = vmatpush3.bf16.msra.mxu1 %v1456_v39  ;;  %3926 = vmatprep.mubr.bf16.mxu1 %v4998_v44  ;;  %v1450_v44 = vpack.c.bf16 %v3957_v21, %v3956_v18 }
 0x52e   : > { %3972 = vmatprep.subr.bf16.mxu1 %v1455_v41 }
 0x531   : > { %3973 = vmatpush3.bf16.msra.mxu1 %v1455_v41 }
 0x532   : > { %3974 = vmatprep.subr.bf16.mxu1 %v1454_v42 }
 0x534   : > { %3927 = vmatmul.mubr.bf16.gmra.mxu1 %v5003_v45  ;;  %v4428_v45 = vld [vmem:[%s4976_s29 + $0x40] sm:$0xff]  }
 0x535   : > { %3975 = vmatpush3.bf16.msra.mxu1 %v1454_v42  ;;  %3930 = vmatprep.mubr.bf16.mxu1 %v5006_v46  ;;  %v1449_v46 = vpack.c.bf16 %v1389_v22, %v1386_v19  ;;  %v1459_v19 = vsub.s32 3, %v5023_v57 }
 0x536   : > { %3976 = vmatprep.subr.bf16.mxu1 %v1453_v50 }
 0x537   : > { %v1460_v22 = vrot.slane %v5026_v59, %v1459_v19 }
 0x539   : > { %3977 = vmatpush3.bf16.msra.mxu1 %v1453_v50 }
 0x53a   : > { %3978 = vmatprep.subr.bf16.mxu1 %v1452_v51 }
 0x53c   : > { %3931 = vmatmul.mubr.bf16.gmra.mxu1 %v5011_v47  ;;  %v5060_v47 = vld [vmem:[%s4976_s29 + $0x48] sm:$0xff]  }
 0x53d   : > { %3979 = vmatpush3.bf16.msra.mxu1 %v1452_v51  ;;  %3934 = vmatprep.mubr.bf16.mxu1 %v5014_v48  ;;  %v5063_v48 = vld [vmem:[%s4976_s29 + $0x50] sm:$0xff]  }
 0x53e   : > { %3980 = vmatprep.subr.bf16.mxu1 %v1451_v43 }
 0x541   : > { %3981 = vmatpush3.bf16.msra.mxu1 %v1451_v43 }
 0x542   : > { %3982 = vmatprep.subr.bf16.mxu1 %v1450_v44 }
 0x544   : > { %3935 = vmatmul.mubr.bf16.gmra.mxu1 %v5019_v49  ;;  %v5076_v49 = vld [vmem:[%s4976_s29 + $0x68] sm:$0xff]  }
 0x545   : > { %3983 = vmatpush3.bf16.msra.mxu1 %v1450_v44  ;;  %3986 = vmatprep.mubr.bf16.mxu1 %v4428_v45 }
 0x546   : > { %3984 = vmatprep.subr.bf16.mxu1 %v1449_v46 }
 0x549   : > { %3985 = vmatpush3.bf16.msra.mxu1 %v1449_v46 }
 0x54c   : > { %3987 = vmatmul.mubr.bf16.vlgmr.msra.gmra.mxu1 %v5060_v47 }
 0x54d   : > { %3990 = vmatprep.mubr.bf16.mxu1 %v5063_v48 }
 0x554   : > { %3991 = vmatmul.mubr.bf16.gmra.mxu1 %v5068_v52 }
 0x555   : > { %3994 = vmatprep.mubr.bf16.mxu1 %v5071_v53 }
 0x55c   : > { %3995 = vmatmul.mubr.bf16.gmra.mxu1 %v5076_v49 }
 0x55d   : > { %3998 = vmatprep.mubr.bf16.mxu1 %v5079_v54 }
 0x564   : > { %3999 = vmatmul.mubr.bf16.gmra.mxu1 %v5084_v55 }
 0x565   : > { %4050 = vmatprep.mubr.bf16.mxu1 %v4428_v45 }
 0x5ec   : > { %v5087_v3 = vpop.f32.mrf.mxu1 }
 0x5ee   : > { %v5089_v4 = vpop.f32.mrf.mxu1 }
 0x5f0   : > { %v5091_v5 = vpop.f32.mrf.mxu1 }
 0x5f2   : > { %v5093_v6 = vpop.f32.mrf.mxu1 }
 0x5f4   : > { %v5095_v7 = vpop.f32.mrf.mxu1 }
 0x5f6   : > { %v5097_v8 = vpop.f32.mrf.mxu1 }
 0x5f8   : > { %v5099_v9 = vpop.f32.mrf.mxu1 }
 0x5fa   : > { %v5101_v10 = vpop.f32.mrf.mxu1 }
 0x5fc   : > { %v5103_v11 = vpop.f32.mrf.mxu1 }
 0x5fe   : > { %v5105_v12 = vpop.f32.mrf.mxu1 }
 0x600   : > { %v5107_v13 = vpop.f32.mrf.mxu1 }
 0x602   : > { %v5109_v14 = vpop.f32.mrf.mxu1 }
 0x604   : > { %v5111_v15 = vpop.f32.mrf.mxu1 }
 0x606   : > { %v5113_v17 = vpop.f32.mrf.mxu1 }
 0x608   : > { %v5115_v18 = vpop.f32.mrf.mxu1 }
 0x60a   : > { %v5118_v20 = vpop.f32.mrf.mxu1 }
 0x60c   : > { %v3988_v21 = vpop.f32.mrf.mxu1 }
 0x60d   : > { %v1552_v27 = vadd.f32 %v3988_v21, %v1460_v22 }
 0x60e   : > { %v1543_v23 = vpop.f32.mrf.mxu1 }
 0x60f   : > { %v1544_v24 = vadd.f32 %v1543_v23, %v1460_v22 }
 0x610   : > { %v3989_v25 = vpop.f32.mrf.mxu1 }
 0x611   : > { %v1555_v26 = vadd.f32 %v3989_v25, %v1460_v22  ;;  %4573 = vtanh.f32 %v1544_v24 }
 0x612   : > { %v1546_v28 = vpop.f32.mrf.mxu1 }
 0x613   : > { %v1547_v29 = vadd.f32 %v1546_v28, %v1460_v22  ;;  %4575 = vtanh.f32 %v1555_v26 }
 0x614   : > { %v3992_v30 = vpop.f32.mrf.mxu1 }
 0x615   : > { %4577 = vtanh.f32 %v1547_v29  ;;  %v1568_v35 = vadd.f32 %v3992_v30, %v1460_v22 }
 0x616   : > { %4579 = vtanh.f32 %v1552_v27  ;;  %v1559_v31 = vpop.f32.mrf.mxu1 }
 0x617   : > { %v1560_v32 = vadd.f32 %v1559_v31, %v1460_v22 }
 0x618   : > { %v3993_v33 = vpop.f32.mrf.mxu1 }
 0x619   : > { %v1571_v34 = vadd.f32 %v3993_v33, %v1460_v22  ;;  %4581 = vtanh.f32 %v1560_v32 }
 0x61a   : > { %v1562_v36 = vpop.f32.mrf.mxu1 }
 0x61b   : > { %v1563_v59 = vadd.f32 %v1562_v36, %v1460_v22  ;;  %4583 = vtanh.f32 %v1571_v34 }
 0x61c   : > { %v3996_v37 = vpop.f32.mrf.mxu1 }
 0x61d   : > { %4585 = vtanh.f32 %v1563_v59  ;;  %v1584_v43 = vadd.f32 %v3996_v37, %v1460_v22 }
 0x61e   : > { %4587 = vtanh.f32 %v1568_v35  ;;  %v1575_v38 = vpop.f32.mrf.mxu1  ;;  %v4574_v40 = vpop.eup %4573 }
 0x61f   : > { %v1576_v39 = vadd.f32 %v1575_v38, %v1460_v22 }
 0x620   : > { %v3997_v41 = vpop.f32.mrf.mxu1  ;;  %v4576_v42 = vpop.eup %4575 }
 0x621   : > { %v1587_v50 = vadd.f32 %v3997_v41, %v1460_v22  ;;  %4589 = vtanh.f32 %v1576_v39  ;;  %v4444_v39 = vld [vmem:[#allocation2 + $0x178] sm:$0xff]  }
 0x622   : > { %v4578_v51 = vpop.eup %4577  ;;  %v1578_v44 = vpop.f32.mrf.mxu1  ;;  %4066 = vmatprep.subr.bf16.mxu0 %v4444_v39 }
 0x623   : > { %v4580_v45 = vpop.eup %4579  ;;  %v1579_v46 = vadd.f32 %v1578_v44, %v1460_v22  ;;  %v1622_v56 = vpack.c.bf16 %v4578_v51, %v4574_v40  ;;  %4591 = vtanh.f32 %v1587_v50  ;;  %v4445_v40 = vld [vmem:[#allocation2 + $0x170] sm:$0xff]  }
 0x624   : > { %v4000_v60 = vpop.f32.mrf.mxu1  ;;  %v1623_v62 = vpack.c.bf16 %v4576_v42, %v4580_v45 }
 0x625   : > { %4593 = vtanh.f32 %v1579_v46  ;;  %4018 = vmatprep.mubr.bf16.mxu0 %v1622_v56  ;;  %v1600_v23 = vadd.f32 %v4000_v60, %v1460_v22 }
 0x626   : > { %4595 = vtanh.f32 %v1584_v43  ;;  %v1591_v61 = vpop.f32.mrf.mxu1  ;;  %4019 = vmatmul.mubr.bf16.vlgmr.msra.gmra.mxu0 %v1623_v62  ;;  %v4582_v0 = vpop.eup %4581 }
 0x627   : > { %v1592_v63 = vadd.f32 %v1591_v61, %v1460_v22  ;;  %4067 = vmatpush3.bf16.msra.mxu0 %v4444_v39 }
 0x628   : > { %v4001_v1 = vpop.f32.mrf.mxu1  ;;  %v4584_v2 = vpop.eup %4583  ;;  %4068 = vmatprep.subr.bf16.mxu0 %v4445_v40 }
 0x629   : > { %v1603_v19 = vadd.f32 %v4001_v1, %v1460_v22  ;;  %4597 = vtanh.f32 %v1592_v63 }
 0x62a   : > { %v4586_v21 = vpop.eup %4585  ;;  %v1594_v24 = vpop.f32.mrf.mxu1 }
 0x62b   : > { %v4588_v25 = vpop.eup %4587  ;;  %v1595_v26 = vadd.f32 %v1594_v24, %v1460_v22  ;;  %v1624_v27 = vpack.c.bf16 %v4586_v21, %v4582_v0  ;;  %4599 = vtanh.f32 %v1603_v19  ;;  %4069 = vmatpush3.bf16.msra.mxu0 %v4445_v40 }
 0x62c   : > { %v1625_v28 = vpack.c.bf16 %v4584_v2, %v4588_v25 }
 0x62d   : > { %4601 = vtanh.f32 %v1595_v26  ;;  %4022 = vmatprep.mubr.bf16.mxu0 %v1624_v27 }
 0x62e   : > { %4603 = vtanh.f32 %v1600_v23  ;;  %4023 = vmatmul.mubr.bf16.gmra.mxu0 %v1625_v28  ;;  %v4590_v29 = vpop.eup %4589 }
 0x630   : > { %v4592_v30 = vpop.eup %4591 }
 0x632   : > { %v4594_v31 = vpop.eup %4593 }
 0x633   : > { %v4596_v32 = vpop.eup %4595  ;;  %v1626_v33 = vpack.c.bf16 %v4594_v31, %v4590_v29  ;;  %v4446_v29 = vld [vmem:[#allocation2 + $0x168] sm:$0xff]   ;;  %v4448_v31 = vld [vmem:[#allocation2 + $0x158] sm:$0xff]  }
 0x634   : > { %v1627_v34 = vpack.c.bf16 %v4592_v30, %v4596_v32  ;;  %4070 = vmatprep.subr.bf16.mxu0 %v4446_v29  ;;  %v4447_v30 = vld [vmem:[#allocation2 + $0x160] sm:$0xff]  }
 0x635   : > { %4026 = vmatprep.mubr.bf16.mxu0 %v1626_v33  ;;  %4071 = vmatpush3.bf16.msra.mxu0 %v4446_v29 }
 0x636   : > { %4027 = vmatmul.mubr.bf16.gmra.mxu0 %v1627_v34  ;;  %v4598_v35 = vpop.eup %4597  ;;  %4072 = vmatprep.subr.bf16.mxu0 %v4447_v30 }
 0x638   : > { %v4600_v36 = vpop.eup %4599 }
 0x639   : > { %4073 = vmatpush3.bf16.msra.mxu0 %v4447_v30 }
 0x63a   : > { %v4602_v59 = vpop.eup %4601  ;;  %4074 = vmatprep.subr.bf16.mxu0 %v4448_v31 }
 0x63b   : > { %v4604_v37 = vpop.eup %4603  ;;  %v1628_v22 = vpack.c.bf16 %v4602_v59, %v4598_v35 }
 0x63c   : > { %v1629_v38 = vpack.c.bf16 %v4600_v36, %v4604_v37 }
 0x63d   : > { %4030 = vmatprep.mubr.bf16.mxu0 %v1628_v22  ;;  %4075 = vmatpush3.bf16.msra.mxu0 %v4448_v31 }
 0x63e   : > { %4031 = vmatmul.mubr.bf16.gmra.mxu0 %v1629_v38 }
 0x6e6   : > { %v4020_v41 = vpop.f32.mrf.mxu0 }
 0x6e8   : > { %v1729_v42 = vpop.f32.mrf.mxu0 }
 0x6ea   : > { %v4021_v50 = vpop.f32.mrf.mxu0 }
 0x6eb   : > { %v1793_v27 = vpack.c.bf16 %v4021_v50, %v4020_v41 }
 0x6ec   : > { %v1732_v51 = vpop.f32.mrf.mxu0 }
 0x6ed   : > { %v1792_v28 = vpack.c.bf16 %v1732_v51, %v1729_v42 }
 0x6ee   : > { %v4024_v43 = vpop.f32.mrf.mxu0 }
 0x6f0   : > { %v1745_v44 = vpop.f32.mrf.mxu0 }
 0x6f2   : > { %v4025_v45 = vpop.f32.mrf.mxu0 }
 0x6f3   : > { %v1795_v25 = vpack.c.bf16 %v4025_v45, %v4024_v43 }
 0x6f4   : > { %v1748_v46 = vpop.f32.mrf.mxu0 }
 0x6f5   : > { %v1794_v26 = vpack.c.bf16 %v1748_v46, %v1745_v44 }
 0x6f6   : > { %v4028_v56 = vpop.f32.mrf.mxu0 }
 0x6f8   : > { %v1761_v60 = vpop.f32.mrf.mxu0 }
 0x6fa   : > { %v4029_v62 = vpop.f32.mrf.mxu0 }
 0x6fb   : > { %v1797_v23 = vpack.c.bf16 %v4029_v62, %v4028_v56 }
 0x6fc   : > { %v1764_v61 = vpop.f32.mrf.mxu0 }
 0x6fd   : > { %v1796_v24 = vpack.c.bf16 %v1764_v61, %v1761_v60 }
 0x6fe   : > { %v4032_v63 = vpop.f32.mrf.mxu0 }
 0x700   : > { %v1777_v0 = vpop.f32.mrf.mxu0 }
 0x702   : > { %v4033_v1 = vpop.f32.mrf.mxu0 }
 0x703   : > { %v1799_v2 = vpack.c.bf16 %v4033_v1, %v4032_v63 }
 0x704   : > { %v1780_v19 = vpop.f32.mrf.mxu0 }
 0x705   : > { %v1798_v21 = vpack.c.bf16 %v1780_v19, %v1777_v0  ;;  %4034 = vmatprep.subr.bf16.mxu1 %v1799_v2 }
 0x706   : > { %4035 = vmatpush3.bf16.msra.mxu1 %v1799_v2 }
 0x707   : > { %4036 = vmatprep.subr.bf16.mxu1 %v1798_v21 }
 0x70a   : > { %4037 = vmatpush3.bf16.msra.mxu1 %v1798_v21 }
 0x70b   : > { %4038 = vmatprep.subr.bf16.mxu1 %v1797_v23 }
 0x70e   : > { %4039 = vmatpush3.bf16.msra.mxu1 %v1797_v23 }
 0x70f   : > { %4040 = vmatprep.subr.bf16.mxu1 %v1796_v24 }
 0x712   : > { %4041 = vmatpush3.bf16.msra.mxu1 %v1796_v24 }
 0x713   : > { %4042 = vmatprep.subr.bf16.mxu1 %v1795_v25 }
 0x716   : > { %4043 = vmatpush3.bf16.msra.mxu1 %v1795_v25 }
 0x717   : > { %4044 = vmatprep.subr.bf16.mxu1 %v1794_v26 }
 0x71a   : > { %4045 = vmatpush3.bf16.msra.mxu1 %v1794_v26 }
 0x71b   : > { %4046 = vmatprep.subr.bf16.mxu1 %v1793_v27 }
 0x71e   : > { %4047 = vmatpush3.bf16.msra.mxu1 %v1793_v27 }
 0x71f   : > { %4048 = vmatprep.subr.bf16.mxu1 %v1792_v28 }
 0x722   : > { %4049 = vmatpush3.bf16.msra.mxu1 %v1792_v28 }
 0x725   : > { %4051 = vmatmul.mubr.bf16.vlgmr.msra.gmra.mxu1 %v5060_v47  ;;  %v4449_v47 = vld [vmem:[#allocation2 + $0x150] sm:$0xff]  }
 0x726   : > { %4054 = vmatprep.mubr.bf16.mxu1 %v5063_v48  ;;  %4076 = vmatprep.subr.bf16.mxu0 %v4449_v47  ;;  %v4450_v48 = vld [vmem:[#allocation2 + $0x148] sm:$0xff]  }
 0x727   : > { %4077 = vmatpush3.bf16.msra.mxu0 %v4449_v47 }
 0x728   : > { %4078 = vmatprep.subr.bf16.mxu0 %v4450_v48 }
 0x72b   : > { %4079 = vmatpush3.bf16.msra.mxu0 %v4450_v48 }
 0x72d   : > { %4055 = vmatmul.mubr.bf16.gmra.mxu1 %v5068_v52  ;;  %v4451_v52 = vld [vmem:[#allocation2 + $0x140] sm:$0xff]  }
 0x72e   : > { %4058 = vmatprep.mubr.bf16.mxu1 %v5071_v53  ;;  %4080 = vmatprep.subr.bf16.mxu0 %v4451_v52  ;;  %v1802_v53 = vsub.s32 4, %v5023_v57 }
 0x72f   : > { %4081 = vmatpush3.bf16.msra.mxu0 %v4451_v52 }
 0x735   : > { %4059 = vmatmul.mubr.bf16.gmra.mxu1 %v5076_v49 }
 0x736   : > { %4062 = vmatprep.mubr.bf16.mxu1 %v5079_v54  ;;  %v5129_v54 = vld [vmem:[#allocation5] sm:$0xff] }
 0x73d   : > { %4063 = vmatmul.mubr.bf16.gmra.mxu1 %v5084_v55  ;;  %v1803_v55 = vrot.slane %v5129_v54, %v1802_v53 }
 0x7e5   : > { %v4052_v49 = vpop.f32.mrf.mxu1 }
 0x7e6   : > { %v1847_v36 = vadd.f32 %v4052_v49, %v1803_v55 }
 0x7e7   : > { %v1838_v32 = vpop.f32.mrf.mxu1 }
 0x7e8   : > { %v1839_v33 = vadd.f32 %v1838_v32, %v1803_v55 }
 0x7e9   : > { %v4053_v34 = vpop.f32.mrf.mxu1 }
 0x7ea   : > { %v1850_v35 = vadd.f32 %v4053_v34, %v1803_v55  ;;  %4605 = vtanh.f32 %v1839_v33 }
 0x7eb   : > { %v1841_v59 = vpop.f32.mrf.mxu1 }
 0x7ec   : > { %v1842_v37 = vadd.f32 %v1841_v59, %v1803_v55  ;;  %4607 = vtanh.f32 %v1850_v35 }
 0x7ed   : > { %v4056_v22 = vpop.f32.mrf.mxu1 }
 0x7ee   : > { %4609 = vtanh.f32 %v1842_v37  ;;  %v1863_v42 = vadd.f32 %v4056_v22, %v1803_v55 }
 0x7ef   : > { %4611 = vtanh.f32 %v1847_v36  ;;  %v1854_v38 = vpop.f32.mrf.mxu1 }
 0x7f0   : > { %v1855_v39 = vadd.f32 %v1854_v38, %v1803_v55 }
 0x7f1   : > { %v4057_v40 = vpop.f32.mrf.mxu1 }
 0x7f2   : > { %v1866_v41 = vadd.f32 %v4057_v40, %v1803_v55  ;;  %4613 = vtanh.f32 %v1855_v39 }
 0x7f3   : > { %v1857_v50 = vpop.f32.mrf.mxu1 }
 0x7f4   : > { %v1858_v51 = vadd.f32 %v1857_v50, %v1803_v55  ;;  %4615 = vtanh.f32 %v1866_v41  ;;  %v4452_v41 = vld [vmem:[%s4976_s29 + $0x80] sm:$0xff]  }
 0x7f5   : > { %v4060_v43 = vpop.f32.mrf.mxu1  ;;  %4114 = vmatprep.mubr.bf16.mxu1 %v4452_v41  ;;  %v4469_v50 = vld [vmem:[#allocation2 + $0x1f0] sm:$0xff]   ;;  %v4466_v41 = vld [vmem:[#allocation2 + $0x188] sm:$0xff]  }
 0x7f6   : > { %4617 = vtanh.f32 %v1858_v51  ;;  %v1879_v63 = vadd.f32 %v4060_v43, %v1803_v55  ;;  %v4470_v51 = vld [vmem:[#allocation2 + $0x1e8] sm:$0xff]   ;;  %v4471_v43 = vld [vmem:[#allocation2 + $0x1e0] sm:$0xff]  }
 0x7f7   : > { %4619 = vtanh.f32 %v1863_v42  ;;  %v1870_v44 = vpop.f32.mrf.mxu1  ;;  %v4606_v46 = vpop.eup %4605  ;;  %v4468_v42 = vld [vmem:[#allocation2 + $0x1f8] sm:$0xff]  }
 0x7f8   : > { %v1871_v45 = vadd.f32 %v1870_v44, %v1803_v55  ;;  %4130 = vmatprep.subr.bf16.mxu0 %v4468_v42 }
 0x7f9   : > { %v4061_v56 = vpop.f32.mrf.mxu1  ;;  %v4608_v60 = vpop.eup %4607 }
 0x7fa   : > { %v1882_v62 = vadd.f32 %v4061_v56, %v1803_v55  ;;  %4621 = vtanh.f32 %v1871_v45 }
 0x7fb   : > { %v4610_v61 = vpop.eup %4609  ;;  %v1873_v0 = vpop.f32.mrf.mxu1 }
 0x7fc   : > { %v4612_v1 = vpop.eup %4611  ;;  %v1874_v2 = vadd.f32 %v1873_v0, %v1803_v55  ;;  %v1917_v19 = vpack.c.bf16 %v4610_v61, %v4606_v46  ;;  %4623 = vtanh.f32 %v1882_v62  ;;  %v4472_v46 = vld [vmem:[#allocation2 + $0x1d8] sm:$0xff]  }
 0x7fd   : > { %v4064_v21 = vpop.f32.mrf.mxu1  ;;  %v1918_v23 = vpack.c.bf16 %v4608_v60, %v4612_v1 }
 0x7fe   : > { %4625 = vtanh.f32 %v1874_v2  ;;  %4082 = vmatprep.mubr.bf16.mxu0 %v1917_v19  ;;  %v1895_v31 = vadd.f32 %v4064_v21, %v1803_v55 }
 0x7ff   : > { %4627 = vtanh.f32 %v1879_v63  ;;  %v1886_v24 = vpop.f32.mrf.mxu1  ;;  %4083 = vmatmul.mubr.bf16.vlgmr.msra.gmra.mxu0 %v1918_v23  ;;  %v4614_v26 = vpop.eup %4613 }
 0x800   : > { %v1887_v25 = vadd.f32 %v1886_v24, %v1803_v55  ;;  %4131 = vmatpush3.bf16.msra.mxu0 %v4468_v42 }
 0x801   : > { %v4065_v27 = vpop.f32.mrf.mxu1  ;;  %v4616_v28 = vpop.eup %4615  ;;  %4132 = vmatprep.subr.bf16.mxu0 %v4469_v50 }
 0x802   : > { %v1898_v29 = vadd.f32 %v4065_v27, %v1803_v55  ;;  %4629 = vtanh.f32 %v1887_v25 }
 0x803   : > { %v4618_v30 = vpop.eup %4617  ;;  %v1889_v47 = vpop.f32.mrf.mxu1 }
 0x804   : > { %v4620_v48 = vpop.eup %4619  ;;  %v1890_v52 = vadd.f32 %v1889_v47, %v1803_v55  ;;  %v1919_v53 = vpack.c.bf16 %v4618_v30, %v4614_v26  ;;  %4631 = vtanh.f32 %v1898_v29  ;;  %4133 = vmatpush3.bf16.msra.mxu0 %v4469_v50  ;;  %v4465_v50 = vld [vmem:[%s4976_s29 + $0xb8] sm:$0xff]  }
 0x805   : > { %v1920_v49 = vpack.c.bf16 %v4616_v28, %v4620_v48  ;;  %4134 = vmatprep.subr.bf16.mxu0 %v4470_v51 }
 0x806   : > { %4633 = vtanh.f32 %v1890_v52  ;;  %4086 = vmatprep.mubr.bf16.mxu0 %v1919_v53  ;;  %v4454_v53 = vld [vmem:[#allocation2 + $0x1b8] sm:$0xff]  }
 0x807   : > { %4635 = vtanh.f32 %v1895_v31  ;;  %4087 = vmatmul.mubr.bf16.gmra.mxu0 %v1920_v49  ;;  %v4622_v32 = vpop.eup %4621  ;;  %v4453_v49 = vld [vmem:[%s4976_s29 + $0x88] sm:$0xff]  }
 0x808   : > { %4135 = vmatpush3.bf16.msra.mxu0 %v4470_v51 }
 0x809   : > { %v4624_v33 = vpop.eup %4623  ;;  %4136 = vmatprep.subr.bf16.mxu0 %v4471_v43 }
 0x80b   : > { %v4626_v34 = vpop.eup %4625 }
 0x80c   : > { %v4628_v35 = vpop.eup %4627  ;;  %v1921_v36 = vpack.c.bf16 %v4626_v34, %v4622_v32  ;;  %4137 = vmatpush3.bf16.msra.mxu0 %v4471_v43  ;;  %v4456_v32 = vld [vmem:[%s4976_s29 + $0x90] sm:$0xff]   ;;  %v4458_v34 = vld [vmem:[#allocation2 + $0x1a8] sm:$0xff]  }
 0x80d   : > { %v1922_v59 = vpack.c.bf16 %v4624_v33, %v4628_v35  ;;  %4138 = vmatprep.subr.bf16.mxu0 %v4472_v46  ;;  %v4455_v33 = vld [vmem:[#allocation2 + $0x1b0] sm:$0xff]   ;;  %v4457_v35 = vld [vmem:[%s4976_s29 + $0x98] sm:$0xff]   ;;  %v4467_v43 = vld [vmem:[#allocation2 + $0x180] sm:$0xff]  }
 0x80e   : > { %4090 = vmatprep.mubr.bf16.mxu0 %v1921_v36  ;;  %v4460_v36 = vld [vmem:[%s4976_s29 + $0xa0] sm:$0xff]  }
 0x80f   : > { %4091 = vmatmul.mubr.bf16.gmra.mxu0 %v1922_v59  ;;  %v4630_v37 = vpop.eup %4629  ;;  %v4459_v59 = vld [vmem:[#allocation2 + $0x1a0] sm:$0xff]  }
 0x810   : > { %4139 = vmatpush3.bf16.msra.mxu0 %v4472_v46 }
 0x811   : > { %v4632_v22 = vpop.eup %4631 }
 0x813   : > { %v4634_v38 = vpop.eup %4633 }
 0x814   : > { %v4636_v55 = vpop.eup %4635  ;;  %v1923_v39 = vpack.c.bf16 %v4634_v38, %v4630_v37  ;;  %v4462_v37 = vld [vmem:[#allocation2 + $0x198] sm:$0xff]   ;;  %v1108_v38 = vsub.s32 2, %v5023_v57 }
 0x815   : > { %v1924_v40 = vpack.c.bf16 %v4632_v22, %v4636_v55  ;;  %v4461_v22 = vld [vmem:[%s4976_s29 + $0xa8] sm:$0xff]   ;;  %v4464_v55 = vld [vmem:[%s4976_s29 + $0xb0] sm:$0xff]  }
 0x816   : > { %4094 = vmatprep.mubr.bf16.mxu0 %v1923_v39  ;;  %v4463_v39 = vld [vmem:[#allocation2 + $0x190] sm:$0xff]  }
 0x817   : > { %4095 = vmatmul.mubr.bf16.gmra.mxu0 %v1924_v40  ;;  %v1109_v40 = vrot.slane %v5129_v54, %v1108_v38 }
 0x819   : > { %v5142_v42 = vadd.f32 %v5093_v6, %v1109_v40  ;;  %v5146_v51 = vadd.f32 %v5089_v4, %v1109_v40  ;;  %v5154_v6 = vadd.f32 %v5101_v10, %v1109_v40  ;;  %v5157_v46 = vadd.f32 %v5087_v3, %v1109_v40 }
 0x81a   : > { %v5160_v4 = vadd.f32 %v5097_v8, %v1109_v40  ;;  %v5170_v10 = vadd.f32 %v5109_v14, %v1109_v40  ;;  %v5173_v3 = vadd.f32 %v5095_v7, %v1109_v40  ;;  %v5176_v8 = vadd.f32 %v5105_v12, %v1109_v40 }
 0x81b   : > { %v5186_v14 = vadd.f32 %v5118_v20, %v1109_v40  ;;  %v5189_v7 = vadd.f32 %v5103_v11, %v1109_v40  ;;  %v5192_v12 = vadd.f32 %v5113_v17, %v1109_v40  ;;  %v5202_v20 = vadd.f32 %v5111_v15, %v1109_v40  ;;  %v4473_v17 = vld [vmem:[#allocation2 + $0x1d0] sm:$0xff]  }
 0x81c   : > { %4140 = vmatprep.subr.bf16.mxu0 %v4473_v17 }
 0x81d   : > { %4141 = vmatpush3.bf16.msra.mxu0 %v4473_v17 }
 0x8bf   : > { %v4084_v44 = vpop.f32.mrf.mxu0 }
 0x8c1   : > { %v2040_v45 = vpop.f32.mrf.mxu0 }
 0x8c3   : > { %v4085_v56 = vpop.f32.mrf.mxu0 }
 0x8c4   : > { %v2104_v48 = vpack.c.bf16 %v4085_v56, %v4084_v44  ;;  %v2288_v44 = vpack.c.bf16 %v5142_v42, %v5146_v51 }
 0x8c5   : > { %v2043_v60 = vpop.f32.mrf.mxu0 }
 0x8c6   : > { %v2103_v52 = vpack.c.bf16 %v2043_v60, %v2040_v45  ;;  %v5151_v45 = vadd.f32 %v5091_v5, %v1109_v40  ;;  %v2290_v60 = vpack.c.bf16 %v5154_v6, %v5160_v4  ;;  %v5167_v5 = vadd.f32 %v5099_v9, %v1109_v40 }
 0x8c7   : > { %v4088_v62 = vpop.f32.mrf.mxu0  ;;  %v5183_v9 = vadd.f32 %v5107_v13, %v1109_v40  ;;  %v5199_v13 = vadd.f32 %v5115_v18, %v1109_v40  ;;  %v3468_v18 = vld [vmem:[%s4976_s29 + $0xc0] sm:$0xff]  }
 0x8c8   : > { %v2289_v56 = vpack.c.bf16 %v5151_v45, %v5157_v46 }
 0x8c9   : > { %v2056_v61 = vpop.f32.mrf.mxu0  ;;  %v2295_v11 = vpack.c.bf16 %v5199_v13, %v5202_v20 }
 0x8cb   : > { %v4089_v63 = vpop.f32.mrf.mxu0 }
 0x8cc   : > { %v2106_v31 = vpack.c.bf16 %v4089_v63, %v4088_v62  ;;  %v2291_v62 = vpack.c.bf16 %v5167_v5, %v5173_v3  ;;  %v2293_v63 = vpack.c.bf16 %v5183_v9, %v5189_v7 }
 0x8cd   : > { %v2059_v0 = vpop.f32.mrf.mxu0 }
 0x8ce   : > { %v2105_v47 = vpack.c.bf16 %v2059_v0, %v2056_v61  ;;  %v2292_v61 = vpack.c.bf16 %v5170_v10, %v5176_v8  ;;  %v2294_v0 = vpack.c.bf16 %v5186_v14, %v5192_v12 }
 0x8cf   : > { %v4092_v1 = vpop.f32.mrf.mxu0 }
 0x8d1   : > { %v2072_v2 = vpop.f32.mrf.mxu0 }
 0x8d3   : > { %v4093_v19 = vpop.f32.mrf.mxu0 }
 0x8d4   : > { %v2108_v29 = vpack.c.bf16 %v4093_v19, %v4092_v1  ;;  %v4474_v1 = vld [vmem:[#allocation2 + $0x1c8] sm:$0xff]  }
 0x8d5   : > { %v2075_v21 = vpop.f32.mrf.mxu0  ;;  %4142 = vmatprep.subr.bf16.mxu0 %v4474_v1 }
 0x8d6   : > { %v2107_v30 = vpack.c.bf16 %v2075_v21, %v2072_v2  ;;  %4143 = vmatpush3.bf16.msra.mxu0 %v4474_v1  ;;  %v4475_v2 = vld [vmem:[#allocation2 + $0x1c0] sm:$0xff]   ;;  %v3469_v21 = vld [vmem:[%s4976_s29 + $0xc8] sm:$0xff]  }
 0x8d7   : > { %v4096_v23 = vpop.f32.mrf.mxu0  ;;  %4144 = vmatprep.subr.bf16.mxu0 %v4475_v2 }
 0x8d9   : > { %v2088_v24 = vpop.f32.mrf.mxu0 }
 0x8da   : > { %4145 = vmatpush3.bf16.msra.mxu0 %v4475_v2 }
 0x8db   : > { %v4097_v25 = vpop.f32.mrf.mxu0 }
 0x8dc   : > { %v2110_v26 = vpack.c.bf16 %v4097_v25, %v4096_v23  ;;  %v3439_v23 = vunpack.c.h.bf16 %v3469_v21  ;;  %v3435_v25 = vunpack.c.h.bf16 %v3468_v18 }
 0x8dd   : > { %v2091_v27 = vpop.f32.mrf.mxu0 }
 0x8de   : > { %v2109_v28 = vpack.c.bf16 %v2091_v27, %v2088_v24  ;;  %4098 = vmatprep.subr.bf16.mxu1 %v2110_v26  ;;  %v3434_v24 = vunpack.c.l.bf16 %v3468_v18 }
 0x8df   : > { %4099 = vmatpush3.bf16.msra.mxu1 %v2110_v26  ;;  %v3438_v26 = vunpack.c.l.bf16 %v3469_v21 }
 0x8e0   : > { %4100 = vmatprep.subr.bf16.mxu1 %v2109_v28 }
 0x8e3   : > { %4101 = vmatpush3.bf16.msra.mxu1 %v2109_v28 }
 0x8e4   : > { %4102 = vmatprep.subr.bf16.mxu1 %v2108_v29 }
 0x8e7   : > { %4103 = vmatpush3.bf16.msra.mxu1 %v2108_v29 }
 0x8e8   : > { %4104 = vmatprep.subr.bf16.mxu1 %v2107_v30 }
 0x8eb   : > { %4105 = vmatpush3.bf16.msra.mxu1 %v2107_v30 }
 0x8ec   : > { %4106 = vmatprep.subr.bf16.mxu1 %v2106_v31 }
 0x8ef   : > { %4107 = vmatpush3.bf16.msra.mxu1 %v2106_v31 }
 0x8f0   : > { %4108 = vmatprep.subr.bf16.mxu1 %v2105_v47 }
 0x8f3   : > { %4109 = vmatpush3.bf16.msra.mxu1 %v2105_v47 }
 0x8f4   : > { %4110 = vmatprep.subr.bf16.mxu1 %v2104_v48 }
 0x8f7   : > { %4111 = vmatpush3.bf16.msra.mxu1 %v2104_v48 }
 0x8f8   : > { %4112 = vmatprep.subr.bf16.mxu1 %v2103_v52 }
 0x8fb   : > { %4113 = vmatpush3.bf16.msra.mxu1 %v2103_v52  ;;  %v3470_v52 = vld [vmem:[%s4976_s29 + $0xd0] sm:$0xff]  }
 0x8fc   : > { %4162 = vmatprep.subr.bf16.mxu1 %v4454_v53 }
 0x8fe   : > { %4115 = vmatmul.mubr.bf16.vlgmr.msra.gmra.mxu1 %v4453_v49  ;;  %v3471_v49 = vld [vmem:[%s4976_s29 + $0xd8] sm:$0xff]  }
 0x8ff   : > { %4163 = vmatpush3.bf16.msra.mxu1 %v4454_v53  ;;  %4118 = vmatprep.mubr.bf16.mxu1 %v4456_v32 }
 0x900   : > { %4164 = vmatprep.subr.bf16.mxu1 %v4455_v33 }
 0x903   : > { %4165 = vmatpush3.bf16.msra.mxu1 %v4455_v33 }
 0x904   : > { %4166 = vmatprep.subr.bf16.mxu1 %v4458_v34 }
 0x906   : > { %4119 = vmatmul.mubr.bf16.gmra.mxu1 %v4457_v35  ;;  %v3442_v35 = vunpack.c.l.bf16 %v3470_v52 }
 0x907   : > { %4167 = vmatpush3.bf16.msra.mxu1 %v4458_v34  ;;  %4122 = vmatprep.mubr.bf16.mxu1 %v4460_v36  ;;  %v3447_v34 = vunpack.c.h.bf16 %v3471_v49  ;;  %v3443_v36 = vunpack.c.h.bf16 %v3470_v52 }
 0x908   : > { %4168 = vmatprep.subr.bf16.mxu1 %v4459_v59 }
 0x90b   : > { %4169 = vmatpush3.bf16.msra.mxu1 %v4459_v59  ;;  %v3446_v59 = vunpack.c.l.bf16 %v3471_v49 }
 0x90c   : > { %4170 = vmatprep.subr.bf16.mxu1 %v4462_v37 }
 0x90e   : > { %4123 = vmatmul.mubr.bf16.gmra.mxu1 %v4461_v22 }
 0x90f   : > { %4171 = vmatpush3.bf16.msra.mxu1 %v4462_v37  ;;  %4126 = vmatprep.mubr.bf16.mxu1 %v4464_v55 }
 0x910   : > { %4172 = vmatprep.subr.bf16.mxu1 %v4463_v39 }
 0x913   : > { %4173 = vmatpush3.bf16.msra.mxu1 %v4463_v39 }
 0x914   : > { %4174 = vmatprep.subr.bf16.mxu1 %v4466_v41 }
 0x916   : > { %4127 = vmatmul.mubr.bf16.gmra.mxu1 %v4465_v50  ;;  %v3472_v50 = vld [vmem:[%s4976_s29 + $0xe0] sm:$0xff]  }
 0x917   : > { %4175 = vmatpush3.bf16.msra.mxu1 %v4466_v41  ;;  %4178 = vmatprep.mubr.bf16.mxu1 %v2288_v44  ;;  %v3473_v44 = vld [vmem:[%s4976_s29 + $0xe8] sm:$0xff]  }
 0x918   : > { %4176 = vmatprep.subr.bf16.mxu1 %v4467_v43 }
 0x91b   : > { %4177 = vmatpush3.bf16.msra.mxu1 %v4467_v43 }
 0x91e   : > { %4179 = vmatmul.mubr.bf16.vlgmr.msra.gmra.mxu1 %v2289_v56 }
 0x91f   : > { %4182 = vmatprep.mubr.bf16.mxu1 %v2290_v60 }
 0x926   : > { %4183 = vmatmul.mubr.bf16.gmra.mxu1 %v2291_v62  ;;  %v3455_v62 = vunpack.c.h.bf16 %v3473_v44 }
 0x927   : > { %4186 = vmatprep.mubr.bf16.mxu1 %v2292_v61  ;;  %v3450_v61 = vunpack.c.l.bf16 %v3472_v50 }
 0x92e   : > { %4187 = vmatmul.mubr.bf16.gmra.mxu1 %v2293_v63  ;;  %v3451_v63 = vunpack.c.h.bf16 %v3472_v50 }
 0x92f   : > { %4190 = vmatprep.mubr.bf16.mxu1 %v2294_v0  ;;  %v3454_v0 = vunpack.c.l.bf16 %v3473_v44 }
 0x936   : > { %4191 = vmatmul.mubr.bf16.gmra.mxu1 %v2295_v11 }
 0x9be   : > { %v4116_v19 = vpop.f32.mrf.mxu1 }
 0x9bf   : > { %v2234_v47 = vadd.f32 %v4116_v19, %v3438_v26 }
 0x9c0   : > { %v2225_v15 = vpop.f32.mrf.mxu1 }
 0x9c1   : > { %v2226_v30 = vadd.f32 %v3434_v24, %v2225_v15  ;;  %v3474_v15 = vld [vmem:[%s4976_s29 + $0xf0] sm:$0xff]   ;;  %v3475_v24 = vld [vmem:[%s4976_s29 + $0xf8] sm:$0xff]  }
 0x9c2   : > { %v4117_v27 = vpop.f32.mrf.mxu1 }
 0x9c3   : > { %v2237_v28 = vadd.f32 %v4117_v27, %v3439_v23  ;;  %v3463_v27 = vunpack.c.h.bf16 %v3475_v24 }
 0x9c4   : > { %v2228_v29 = vpop.f32.mrf.mxu1 }
 0x9c5   : > { %v2229_v31 = vadd.f32 %v3435_v25, %v2228_v29  ;;  %v2314_v32 = vpack.c.bf16 %v2237_v28, %v2234_v47  ;;  %v3458_v28 = vunpack.c.l.bf16 %v3474_v15  ;;  %v3459_v29 = vunpack.c.h.bf16 %v3474_v15 }
 0x9c6   : > { %v4120_v48 = vpop.f32.mrf.mxu1 }
 0x9c7   : > { %v2313_v53 = vpack.c.bf16 %v2229_v31, %v2226_v30  ;;  %v2250_v40 = vadd.f32 %v4120_v48, %v3446_v59  ;;  %v3462_v30 = vunpack.c.l.bf16 %v3475_v24  ;;  %v4479_v59 = vld [vmem:[#allocation2 + $0x228] sm:$0xff]  }
 0x9c8   : > { %v2241_v33 = vpop.f32.mrf.mxu1 }
 0x9c9   : > { %4146 = vmatprep.mubr.bf16.mxu0 %v2313_v53  ;;  %v2242_v55 = vadd.f32 %v3442_v35, %v2241_v33  ;;  %v4477_v35 = vld [vmem:[#allocation2 + $0x238] sm:$0xff]  }
 0x9ca   : > { %v4121_v37 = vpop.f32.mrf.mxu1  ;;  %4147 = vmatmul.mubr.bf16.vlgmr.msra.gmra.mxu0 %v2314_v32 }
 0x9cb   : > { %v2253_v22 = vadd.f32 %v4121_v37, %v3447_v34  ;;  %v4800_v34 = vmov 0.0   ;;  %v4480_v37 = vld [vmem:[#allocation2 + $0x220] sm:$0xff]  }
 0x9cc   : > { %v2244_v38 = vpop.f32.mrf.mxu1  ;;  %4194 = vmatprep.subr.bf16.mxu0 %v4800_v34  ;;  %4214 = vmatprep.subr.bf16.mxu1 %v4800_v34 }
 0x9cd   : > { %v2245_v39 = vadd.f32 %v3443_v36, %v2244_v38  ;;  %v2316_v56 = vpack.c.bf16 %v2253_v22, %v2250_v40  ;;  %4230 = vmatprep.mubr.msk.bf16.mxu1 %vm4801_vm0, %v4800_v34  ;;  %4215 = vmatpush3.bf16.msra.mxu1 %v4477_v35  ;;  %v4478_v36 = vld [vmem:[#allocation2 + $0x230] sm:$0xff]   ;;  %v4481_v22 = vld [vmem:[#allocation2 + $0x218] sm:$0xff]  }
 0x9ce   : > { %v4124_v41 = vpop.f32.mrf.mxu1  ;;  %4216 = vmatprep.subr.bf16.mxu1 %v4800_v34  ;;  %v4482_v38 = vld [vmem:[#allocation2 + $0x210] sm:$0xff]  }
 0x9cf   : > { %v2315_v43 = vpack.c.bf16 %v2245_v39, %v2242_v55  ;;  %v2266_v18 = vadd.f32 %v4124_v41, %v3454_v0 }
 0x9d0   : > { %v2257_v60 = vpop.f32.mrf.mxu1 }
 0x9d1   : > { %4150 = vmatprep.mubr.bf16.mxu0 %v2315_v43  ;;  %v2258_v2 = vadd.f32 %v3450_v61, %v2257_v60  ;;  %4217 = vmatpush3.bf16.msra.mxu1 %v4478_v36 }
 0x9d2   : > { %v4125_v11 = vpop.f32.mrf.mxu1  ;;  %4151 = vmatmul.mubr.bf16.gmra.mxu0 %v2316_v56  ;;  %4218 = vmatprep.subr.bf16.mxu1 %v4800_v34 }
 0x9d3   : > { %v2269_v17 = vadd.f32 %v4125_v11, %v3455_v62 }
 0x9d4   : > { %v2260_v1 = vpop.f32.mrf.mxu1 }
 0x9d5   : > { %v2261_v19 = vadd.f32 %v3451_v63, %v2260_v1  ;;  %v2318_v25 = vpack.c.bf16 %v2269_v17, %v2266_v18  ;;  %4219 = vmatpush3.bf16.msra.mxu1 %v4479_v59 }
 0x9d6   : > { %v4128_v21 = vpop.f32.mrf.mxu1  ;;  %4220 = vmatprep.subr.bf16.mxu1 %v4800_v34 }
 0x9d7   : > { %v2317_v23 = vpack.c.bf16 %v2261_v19, %v2258_v2  ;;  %v2282_v49 = vadd.f32 %v4128_v21, %v3462_v30 }
 0x9d8   : > { %v2273_v26 = vpop.f32.mrf.mxu1 }
 0x9d9   : > { %4154 = vmatprep.mubr.bf16.mxu0 %v2317_v23  ;;  %v2274_v52 = vadd.f32 %v3458_v28, %v2273_v26  ;;  %4221 = vmatpush3.bf16.msra.mxu1 %v4480_v37  ;;  %v2630_v28 = vsub.s32 6, %v5023_v57 }
 0x9da   : > { %v4129_v31 = vpop.f32.mrf.mxu1  ;;  %4155 = vmatmul.mubr.bf16.gmra.mxu0 %v2318_v25  ;;  %4222 = vmatprep.subr.bf16.mxu1 %v4800_v34 }
 0x9db   : > { %v2285_v47 = vadd.f32 %v4129_v31, %v3463_v27 }
 0x9dc   : > { %v2276_v48 = vpop.f32.mrf.mxu1 }
 0x9dd   : > { %v2277_v53 = vadd.f32 %v3459_v29, %v2276_v48  ;;  %v2320_v33 = vpack.c.bf16 %v2285_v47, %v2282_v49  ;;  %4223 = vmatpush3.bf16.msra.mxu1 %v4481_v22  ;;  %v5244_v48 = vrot.slane %v5129_v54, %v2630_v28 }
 0x9de   : > { %4224 = vmatprep.subr.bf16.mxu1 %v4800_v34  ;;  %v5226_v55 = vpop.f32.mrf.mxu1 }
 0x9df   : > { %v2319_v32 = vpack.c.bf16 %v2277_v53, %v2274_v52 }
 0x9e0   : > { %v5228_v39 = vpop.f32.mrf.mxu1 }
 0x9e1   : > { %4158 = vmatprep.mubr.bf16.mxu0 %v2319_v32  ;;  %4225 = vmatpush3.bf16.msra.mxu1 %v4482_v38 }
 0x9e2   : > { %4159 = vmatmul.mubr.bf16.gmra.mxu0 %v2320_v33  ;;  %4226 = vmatprep.subr.bf16.mxu1 %v4800_v34  ;;  %v5230_v40 = vpop.f32.mrf.mxu1 }
 0x9e3   : > { %4210 = vmatprep.mubr.msk.bf16.mxu0 %vm4801_vm0, %v4800_v34 }
 0x9e4   : > { %v5232_v41 = vpop.f32.mrf.mxu1 }
 0x9e6   : > { %v4184_v50 = vpop.f32.mrf.mxu1 }
 0x9e8   : > { %v5234_v43 = vpop.f32.mrf.mxu1 }
 0x9ea   : > { %v4185_v44 = vpop.f32.mrf.mxu1 }
 0x9ec   : > { %v2584_v56 = vpop.f32.mrf.mxu1 }
 0x9ee   : > { %v4188_v62 = vpop.f32.mrf.mxu1 }
 0x9f0   : > { %v2597_v0 = vpop.f32.mrf.mxu1 }
 0x9f2   : > { %v4189_v1 = vpop.f32.mrf.mxu1 }
 0x9f4   : > { %v2600_v18 = vpop.f32.mrf.mxu1 }
 0x9f6   : > { %v4192_v23 = vpop.f32.mrf.mxu1 }
 0x9f8   : > { %v2613_v26 = vpop.f32.mrf.mxu1 }
 0x9fa   : > { %v4193_v31 = vpop.f32.mrf.mxu1 }
 0x9fc   : > { %v2616_v33 = vpop.f32.mrf.mxu1 }
 0xa8a   : > { %v5236_v60 = vpop.f32.mrf.mxu0 }
 0xa8c   : > { %v5238_v61 = vpop.f32.mrf.mxu0 }
 0xa8e   : > { %v4149_v63 = vpop.f32.mrf.mxu0 }
 0xa90   : > { %v5240_v11 = vpop.f32.mrf.mxu0 }
 0xa92   : > { %v4152_v17 = vpop.f32.mrf.mxu0 }
 0xa94   : > { %v2436_v2 = vpop.f32.mrf.mxu0 }
 0xa96   : > { %v4153_v19 = vpop.f32.mrf.mxu0 }
 0xa98   : > { %v2439_v21 = vpop.f32.mrf.mxu0 }
 0xa9a   : > { %v4156_v15 = vpop.f32.mrf.mxu0 }
 0xa9b   : > { %v2606_v22 = vadd.f32 %v4188_v62, %v4156_v15 }
 0xa9c   : > { %v2452_v24 = vpop.f32.mrf.mxu0 }
 0xa9e   : > { %v4157_v25 = vpop.f32.mrf.mxu0 }
 0xa9f   : > { %v2609_v36 = vadd.f32 %v4189_v1, %v4157_v25  ;;  %v2642_v1 = vadd.f32 %v5244_v48, %v2606_v22  ;;  %v2598_v25 = vadd.f32 %v2597_v0, %v2452_v24 }
 0xaa0   : > { %v2455_v27 = vpop.f32.mrf.mxu0 }
 0xaa1   : > { %v2643_v28 = vadd.f32 %v5244_v48, %v2609_v36 }
 0xaa2   : > { %v4160_v29 = vpop.f32.mrf.mxu0 }
 0xaa3   : > { %v2622_v30 = vadd.f32 %v4192_v23, %v4160_v29  ;;  %v2659_v62 = vadd.f32 %v2643_v28, %v5183_v9  ;;  %v2582_v9 = vadd.f32 %v5234_v43, %v2436_v2  ;;  %v4493_v28 = vld [vmem:[#allocation2 + $0x2b8] sm:$0xff]  }
 0xaa4   : > { %v2468_v47 = vpop.f32.mrf.mxu0 }
 0xaa5   : > { %v2646_v53 = vadd.f32 %v5244_v48, %v2622_v30  ;;  %v2614_v49 = vadd.f32 %v2613_v26, %v2468_v47  ;;  %v2601_v30 = vadd.f32 %v2600_v18, %v2455_v27  ;;  %v2658_v18 = vadd.f32 %v2642_v1, %v5189_v7  ;;  %v4497_v1 = vld [vmem:[#allocation2 + $0x298] sm:$0xff]  }
 0xaa6   : > { %v4161_v52 = vpop.f32.mrf.mxu0  ;;  %v2640_v27 = vadd.f32 %v5244_v48, %v2598_v25  ;;  %v2577_v7 = vadd.f32 %v5230_v40, %v4149_v63  ;;  %v2569_v40 = vadd.f32 %v5232_v41, %v5240_v11  ;;  %v3476_v25 = vld [vmem:[%s4976_s29 + $0x188] sm:$0xff]  }
 0xaa7   : > { %v2625_v32 = vadd.f32 %v4193_v31, %v4161_v52  ;;  %v2662_v38 = vadd.f32 %v2646_v53, %v5202_v20  ;;  %v2644_v23 = vadd.f32 %v5244_v48, %v2614_v49  ;;  %v2593_v20 = vadd.f32 %v4185_v44, %v4153_v19 }
 0xaa8   : > { %v2471_v35 = vpop.f32.mrf.mxu0  ;;  %v2590_v52 = vadd.f32 %v4184_v50, %v4152_v17  ;;  %v2671_v0 = vpack.c.bf16 %v2659_v62, %v2658_v18  ;;  %v2656_v19 = vadd.f32 %v2640_v27, %v5176_v8  ;;  %v2635_v8 = vadd.f32 %v5244_v48, %v2577_v7  ;;  %v4502_v7 = vld [vmem:[#allocation2 + $0x2f0] sm:$0xff]  }
 0xaa9   : > { %v2647_v59 = vadd.f32 %v5244_v48, %v2625_v32  ;;  %v2617_v37 = vadd.f32 %v2616_v33, %v2471_v35  ;;  %v2660_v47 = vadd.f32 %v2644_v23, %v5192_v12  ;;  %v2585_v12 = vadd.f32 %v2584_v56, %v2439_v21  ;;  %v4487_v32 = vld [vmem:[#allocation2 + $0x268] sm:$0xff]   ;;  %v4488_v33 = vld [vmem:[#allocation2 + $0x260] sm:$0xff]   ;;  %v4489_v35 = vld [vmem:[#allocation2 + $0x258] sm:$0xff]  }
 0xaaa   : > { %v2638_v44 = vadd.f32 %v5244_v48, %v2590_v52  ;;  %v2574_v56 = vadd.f32 %v5226_v55, %v5236_v60  ;;  %v2636_v21 = vadd.f32 %v5244_v48, %v2582_v9  ;;  %v2566_v55 = vadd.f32 %v5228_v39, %v5238_v61  ;;  %v4490_v23 = vld [vmem:[#allocation2 + $0x250] sm:$0xff]   ;;  %v4500_v9 = vld [vmem:[#allocation2 + $0x280] sm:$0xff]  }
 0xaab   : > { %v2663_v29 = vadd.f32 %v2647_v59, %v5199_v13  ;;  %v2645_v54 = vadd.f32 %v5244_v48, %v2617_v37  ;;  %v2641_v13 = vadd.f32 %v5244_v48, %v2601_v30  ;;  %v2637_v17 = vadd.f32 %v5244_v48, %v2585_v12  ;;  %v4494_v30 = vld [vmem:[#allocation2 + $0x2b0] sm:$0xff]  }
 0xaac   : > { %v2634_v63 = vadd.f32 %v5244_v48, %v2574_v56  ;;  %v2651_v60 = vadd.f32 %v2635_v8, %v5151_v45  ;;  %v2633_v2 = vadd.f32 %v5244_v48, %v2569_v40  ;;  %v4476_v45 = vld [vmem:[%s4976_s29 + $0x180] sm:$0xff]   ;;  %v3467_v62 = vunpack.c.h.bf16 %v3476_v25 }
 0xaad   : > { %v2673_v26 = vpack.c.bf16 %v2663_v29, %v2662_v38  ;;  %v2661_v31 = vadd.f32 %v2645_v54, %v5186_v14  ;;  %v2639_v14 = vadd.f32 %v5244_v48, %v2593_v20  ;;  %v2657_v24 = vadd.f32 %v2641_v13, %v5170_v10  ;;  %v4491_v29 = vld [vmem:[#allocation2 + $0x248] sm:$0xff]   ;;  %v4492_v54 = vld [vmem:[#allocation2 + $0x240] sm:$0xff]  }
 0xaae   : > { %v2654_v10 = vadd.f32 %v2638_v44, %v5173_v3  ;;  %v2652_v3 = vadd.f32 %v2636_v21, %v5160_v4  ;;  %v2650_v41 = vadd.f32 %v2634_v63, %v5157_v46  ;;  %v2649_v39 = vadd.f32 %v2633_v2, %v5142_v42  ;;  %v4483_v46 = vld [vmem:[#allocation2 + $0x208] sm:$0xff]   ;;  %v4485_v42 = vld [vmem:[#allocation2 + $0x278] sm:$0xff]  }
 0xaaf   : > { %4195 = vmatpush3.bf16.msra.mxu0 %v2673_v26  ;;  %v2672_v15 = vpack.c.bf16 %v2661_v31, %v2660_v47  ;;  %v2655_v50 = vadd.f32 %v2639_v14, %v5167_v5  ;;  %v2670_v53 = vpack.c.bf16 %v2657_v24, %v2656_v19  ;;  %v2653_v5 = vadd.f32 %v2637_v17, %v5154_v6  ;;  %v4495_v26 = vld [vmem:[#allocation2 + $0x2a8] sm:$0xff]   ;;  %v4496_v31 = vld [vmem:[#allocation2 + $0x2a0] sm:$0xff]   ;;  %v4498_v24 = vld [vmem:[#allocation2 + $0x290] sm:$0xff]  }
 0xab0   : > { %4196 = vmatprep.subr.bf16.mxu0 %v4800_v34  ;;  %v2632_v6 = vadd.f32 %v5244_v48, %v2566_v55  ;;  %v2667_v11 = vpack.c.bf16 %v2651_v60, %v2650_v41  ;;  %4227 = vmatpush3.bf16.msra.mxu1 %v4483_v46  ;;  %v4484_v48 = vld [vmem:[#allocation2 + $0x200] sm:$0xff]   ;;  %v3466_v47 = vunpack.c.l.bf16 %v3476_v25  ;;  %v4499_v44 = vld [vmem:[#allocation2 + $0x288] sm:$0xff]   ;;  %v4501_v19 = vld [vmem:[#allocation2 + $0x2f8] sm:$0xff]   ;;  %v2854_v56 = vsub.s32 7, %v5023_v57 }
 0xab1   : > { %v2669_v43 = vpack.c.bf16 %v2655_v50, %v2654_v10  ;;  %v2668_v49 = vpack.c.bf16 %v2653_v5, %v2652_v3  ;;  %4228 = vmatprep.subr.bf16.mxu1 %v4800_v34  ;;  %v4503_v50 = vld [vmem:[#allocation2 + $0x2e8] sm:$0xff]   ;;  %v4504_v17 = vld [vmem:[#allocation2 + $0x2e0] sm:$0xff]  }
 0xab2   : > { %v2648_v4 = vadd.f32 %v2632_v6, %v5146_v51  ;;  %v4486_v51 = vld [vmem:[#allocation2 + $0x270] sm:$0xff]   ;;  %v4638_v10 = vld [vmem:[#allocation5] sm:$0xff]  ;;  %v4507_v41 = vld [vmem:[#allocation2 + $0x2c8] sm:$0xff]  }
 0xab3   : > { %4197 = vmatpush3.bf16.msra.mxu0 %v2672_v15  ;;  %v2855_v21 = vrot.slane %v4638_v10, %v2854_v56  ;;  %v4508_v6 = vld [vmem:[#allocation2 + $0x2c0] sm:$0xff]  }
 0xab4   : > { %4198 = vmatprep.subr.bf16.mxu0 %v4800_v34  ;;  %v2666_v61 = vpack.c.bf16 %v2649_v39, %v2648_v4  ;;  %4229 = vmatpush3.bf16.msra.mxu1 %v4484_v48 }
 0xab5   : > { %4254 = vmatprep.subr.bf16.mxu1 %v4800_v34 }
 0xab7   : > { %4199 = vmatpush3.bf16.msra.mxu0 %v2671_v0 }
 0xab8   : > { %4200 = vmatprep.subr.bf16.mxu0 %v4800_v34 }
 0xabb   : > { %4201 = vmatpush3.bf16.msra.mxu0 %v2670_v53  ;;  %v4505_v53 = vld [vmem:[#allocation2 + $0x2d8] sm:$0xff]  }
 0xabc   : > { %4202 = vmatprep.subr.bf16.mxu0 %v4800_v34 }
 0xabf   : > { %4203 = vmatpush3.bf16.msra.mxu0 %v2669_v43 }
 0xac0   : > { %4204 = vmatprep.subr.bf16.mxu0 %v4800_v34 }
 0xac3   : > { %4205 = vmatpush3.bf16.msra.mxu0 %v2668_v49  ;;  %v4506_v49 = vld [vmem:[#allocation2 + $0x2d0] sm:$0xff]  }
 0xac4   : > { %4206 = vmatprep.subr.bf16.mxu0 %v4800_v34 }
 0xac7   : > { %4207 = vmatpush3.bf16.msra.mxu0 %v2667_v11  ;;  %v218_v11 = vld [vmem:[#allocation5 + $0x8] sm:$0xff] }
 0xac8   : > { %4208 = vmatprep.subr.bf16.mxu0 %v4800_v34  ;;  %v2968_v39 = vrot.slane %v218_v11, %v470_v58 }
 0xacb   : > { %4209 = vmatpush3.bf16.msra.mxu0 %v2666_v61 }
 0xacc   : > { %4234 = vmatprep.subr.bf16.mxu0 %v4800_v34 }
 0xace   : > { %4211 = vmatmul.mubr.bf16.vlgmr.msra.gmra.mxu0 %v4476_v45 }
 0xacf   : > { %4250 = vmatprep.mubr.msk.bf16.mxu0 %vm4801_vm0, %v4800_v34  ;;  %4235 = vmatpush3.bf16.msra.mxu0 %v4485_v42 }
 0xad0   : > { %4236 = vmatprep.subr.bf16.mxu0 %v4800_v34 }
 0xad3   : > { %4237 = vmatpush3.bf16.msra.mxu0 %v4486_v51 }
 0xad4   : > { %4238 = vmatprep.subr.bf16.mxu0 %v4800_v34 }
 0xad7   : > { %4239 = vmatpush3.bf16.msra.mxu0 %v4487_v32 }
 0xad8   : > { %4240 = vmatprep.subr.bf16.mxu0 %v4800_v34 }
 0xadb   : > { %4241 = vmatpush3.bf16.msra.mxu0 %v4488_v33 }
 0xadc   : > { %4242 = vmatprep.subr.bf16.mxu0 %v4800_v34 }
 0xadf   : > { %4243 = vmatpush3.bf16.msra.mxu0 %v4489_v35 }
 0xae0   : > { %4244 = vmatprep.subr.bf16.mxu0 %v4800_v34 }
 0xae3   : > { %4245 = vmatpush3.bf16.msra.mxu0 %v4490_v23 }
 0xae4   : > { %4246 = vmatprep.subr.bf16.mxu0 %v4800_v34 }
 0xae7   : > { %4247 = vmatpush3.bf16.msra.mxu0 %v4491_v29 }
 0xae8   : > { %4248 = vmatprep.subr.bf16.mxu0 %v4800_v34 }
 0xaeb   : > { %4249 = vmatpush3.bf16.msra.mxu0 %v4492_v54 }
 0xaec   : > { %4274 = vmatprep.subr.bf16.mxu0 %v4800_v34 }
 0xb8e   : > { %v2714_v36 = vpop.f32.mrf.mxu0 }
 0xb90   : > { %v4212_v59 = vpop.f32.mrf.mxu0 }
 0xb92   : > { %v2717_v37 = vpop.f32.mrf.mxu0 }
 0xb93   : > { %v2721_v22 = vpack.c.bf16 %v2717_v37, %v2714_v36 }
 0xb94   : > { %v4213_v38 = vpop.f32.mrf.mxu0 }
 0xb95   : > { %4231 = vmatmul.mubr.bf16.vlgmr.msra.gmra.mxu1 %v2721_v22 }
 0xb96   : > { %4270 = vmatprep.mubr.msk.bf16.mxu1 %vm4801_vm0, %v4800_v34  ;;  %4255 = vmatpush3.bf16.msra.mxu1 %v4493_v28 }
 0xb97   : > { %4256 = vmatprep.subr.bf16.mxu1 %v4800_v34 }
 0xb9a   : > { %4257 = vmatpush3.bf16.msra.mxu1 %v4494_v30 }
 0xb9b   : > { %4258 = vmatprep.subr.bf16.mxu1 %v4800_v34 }
 0xb9e   : > { %4259 = vmatpush3.bf16.msra.mxu1 %v4495_v26 }
 0xb9f   : > { %4260 = vmatprep.subr.bf16.mxu1 %v4800_v34 }
 0xba2   : > { %4261 = vmatpush3.bf16.msra.mxu1 %v4496_v31 }
 0xba3   : > { %4262 = vmatprep.subr.bf16.mxu1 %v4800_v34 }
 0xba6   : > { %4263 = vmatpush3.bf16.msra.mxu1 %v4497_v1 }
 0xba7   : > { %4264 = vmatprep.subr.bf16.mxu1 %v4800_v34 }
 0xbaa   : > { %4265 = vmatpush3.bf16.msra.mxu1 %v4498_v24 }
 0xbab   : > { %4266 = vmatprep.subr.bf16.mxu1 %v4800_v34 }
 0xbae   : > { %4267 = vmatpush3.bf16.msra.mxu1 %v4499_v44 }
 0xbaf   : > { %4268 = vmatprep.subr.bf16.mxu1 %v4800_v34 }
 0xbb2   : > { %4269 = vmatpush3.bf16.msra.mxu1 %v4500_v9 }
 0xc55   : > { %v2825_v20 = vpop.f32.mrf.mxu1 }
 0xc56   : > { %v2826_v15 = vadd.f32 %v3466_v47, %v2825_v20 }
 0xc57   : > { %v4232_v13 = vpop.f32.mrf.mxu1 }
 0xc58   : > { %v2832_v14 = vmax.f32 %v2826_v15, 0.0 }
 0xc59   : > { %v2828_v52 = vpop.f32.mrf.mxu1 }
 0xc5a   : > { %v2829_v18 = vadd.f32 %v3467_v62, %v2828_v52 }
 0xc5b   : > { %v4233_v27 = vpop.f32.mrf.mxu1 }
 0xc5c   : > { %v2833_v12 = vmax.f32 %v2829_v18, 0.0 }
 0xc5e   : > { %v2834_v0 = vpack.c.bf16 %v2833_v12, %v2832_v14 }
 0xc60   : > { %4251 = vmatmul.mubr.bf16.vlgmr.msra.gmra.mxu0 %v2834_v0 }
 0xc61   : > { %4290 = vmatprep.mubr.msk.bf16.mxu0 %vm4801_vm0, %v4800_v34  ;;  %4275 = vmatpush3.bf16.msra.mxu0 %v4501_v19 }
 0xc62   : > { %4276 = vmatprep.subr.bf16.mxu0 %v4800_v34 }
 0xc65   : > { %4277 = vmatpush3.bf16.msra.mxu0 %v4502_v7 }
 0xc66   : > { %4278 = vmatprep.subr.bf16.mxu0 %v4800_v34 }
 0xc69   : > { %4279 = vmatpush3.bf16.msra.mxu0 %v4503_v50 }
 0xc6a   : > { %4280 = vmatprep.subr.bf16.mxu0 %v4800_v34 }
 0xc6d   : > { %4281 = vmatpush3.bf16.msra.mxu0 %v4504_v17 }
 0xc6e   : > { %4282 = vmatprep.subr.bf16.mxu0 %v4800_v34 }
 0xc71   : > { %4283 = vmatpush3.bf16.msra.mxu0 %v4505_v53 }
 0xc72   : > { %4284 = vmatprep.subr.bf16.mxu0 %v4800_v34 }
 0xc75   : > { %4285 = vmatpush3.bf16.msra.mxu0 %v4506_v49 }
 0xc76   : > { %4286 = vmatprep.subr.bf16.mxu0 %v4800_v34 }
 0xc79   : > { %4287 = vmatpush3.bf16.msra.mxu0 %v4507_v41 }
 0xc7a   : > { %4288 = vmatprep.subr.bf16.mxu0 %v4800_v34  ;;  %v3081_v34 = vrot.slane %v218_v11, %v813_v16 }
 0xc7d   : > { %4289 = vmatpush3.bf16.msra.mxu0 %v4508_v6 }
 0xd20   : > { %v2938_v8 = vpop.f32.mrf.mxu0 }
 0xd21   : > { %v2939_v43 = vadd.f32 %v2938_v8, %v2855_v21 }
 0xd22   : > { %v4252_v40 = vpop.f32.mrf.mxu0 }
 0xd23   : > { %v2945_v3 = vmax.f32 %v2939_v43, 0.0 }
 0xd24   : > { %v2941_v5 = vpop.f32.mrf.mxu0 }
 0xd25   : > { %v2942_v63 = vadd.f32 %v2941_v5, %v2855_v21 }
 0xd26   : > { %v4253_v55 = vpop.f32.mrf.mxu0 }
 0xd27   : > { %v2946_v60 = vmax.f32 %v2942_v63, 0.0 }
 0xd29   : > { %v2947_v2 = vpack.c.bf16 %v2946_v60, %v2945_v3 }
 0xd2b   : > { %4271 = vmatmul.mubr.bf16.vlgmr.msra.gmra.mxu1 %v2947_v2 }
 0xdeb   : > { %v3051_v4 = vpop.f32.mrf.mxu1 }
 0xdec   : > { %v3052_v45 = vadd.f32 %v3051_v4, %v2968_v39 }
 0xded   : > { %v4272_v61 = vpop.f32.mrf.mxu1 }
 0xdee   : > { %v3058_v51 = vmax.f32 %v3052_v45, 0.0 }
 0xdef   : > { %v3054_v46 = vpop.f32.mrf.mxu1 }
 0xdf0   : > { %v3055_v48 = vadd.f32 %v3054_v46, %v2968_v39 }
 0xdf1   : > { %v4273_v42 = vpop.f32.mrf.mxu1 }
 0xdf2   : > { %v3059_v32 = vmax.f32 %v3055_v48, 0.0 }
 0xdf4   : > { %v3060_v33 = vpack.c.bf16 %v3059_v32, %v3058_v51 }
 0xdf6   : > { %4291 = vmatmul.mubr.bf16.vlgmr.msra.gmra.mxu0 %v3060_v33 }
 0xeb6   : > { %v3164_v35 = vpop.f32.mrf.mxu0 }
 0xeb7   : > { %v3165_v58 = vadd.f32 %v3164_v35, %v3081_v34 }
 0xeb8   : > { %v4292_v36 = vpop.f32.mrf.mxu0 }
 0xeb9   : > { %3171 = vst [vmem:[%s215_s20] sm:$0xff] %v3165_v58 }
 0xeba   : > { %v3167_v59 = vpop.f32.mrf.mxu0 }
 0xebb   : > { %v3168_v57 = vadd.f32 %v3167_v59, %v3081_v34 }
 0xebc   : > { %v4293_v16 = vpop.f32.mrf.mxu0 }
 0xebd   : > { %3172 = vst [vmem:[%s215_s20 + $0x8] sm:$0xff] %v3168_v57 }
 0xebe   : > { %4732 = shalt.err (!%p4729_p2)
}
 0xebf   : > { %s4733_s8 = scalar_lea.hbm %s5338_s28, 256  ;;  %s4737_s26 = scalar_lea.hbm %s5383_s3, 2048 }
 0xec0   : > { %p4734_p5 = scmp.ne.s32.totalorder %s5338_s28, %s4733_s8  ;;  %p4738_p6 = scmp.lt.s32.totalorder %s5338_s28, %s5383_s3 }
 0xec1   : > { %p4739_p13 = scmp.lt.s32.totalorder %s4737_s26, %s4733_s8 }
 0xec2   : > { %p4735_p0 = pnand %p4734_p5, %p5405_p12 }
 0xec3   : > { %p4740_p7 = por %p4739_p13, %p4738_p6 }
 0xec4   : > { %p4736_p3 = pneg %p4735_p0 }
 0xec6   : > { %p4741_p11 = pnand %p4740_p7, %p4736_p3 }
 0xec8   : > { %4744 = shalt.err (!%p4741_p11)
}
 0xec9   : > { %s4803_s23 = smov 128   ;;  %s4804_s20 = smov 8  }
 0xeca   : > { %4307 = dma.vmem_to_hbm [thread:$0]  (%p5405_p12), %s5333_s4, 256, %s5338_s28, %s3174_s6, %s4803_s23, %s4803_s23, %s4804_s20  }
 0xecb PF: > { %p4329_p8 = scmp.ge.s32.totalorder %s4791_s15, 2  ;;  %s3202_s17 = sand.u32 1, %s4779_s12  }
 0xecc   : > { %p5406_p9 = scmp.ne.s32.totalorder %s5393_s25, 0  ;;  %s3203_s19 = scalar_lea.sflag [#allocation4], %s3202_s17 }
 0xece   : > { %p4321_p10 = pnand %p4329_p8, %p5406_p9 }
 0xed0   : > { %p4322_p1 = pneg %p4321_p10 }
 0xed2   : > { %4774 = dma.done.wait (%p4322_p1), %s3203_s19, 256  }
 0xed3   : > { %4776 = vsyncadd (%p4322_p1), %s3203_s19, 4294967040  ;;  %p15_p4 = scmp.ge.s32.totalorder %s4850_s18, 10   ;;  %s5407_s12 = smov %s4783_s13 }
 0xed4   : > { %s5408_s13 = smov %s4787_s14  ;;  %s5409_s14 = smov %s4862_s21 }
 0xed5   : > { %s5410_s15 = smov %s4850_s18  ;;  %17 = sbr.rel (!%p15_p4) target bundleno = 5 (0x5), region = 95 }
 0xeda   :  { %3208 = vsyncpa [#allocation3], 1 }
 0xedb   :  { %3210 = vsyncpa [#allocation3 + $0x1], 1 }
 0xedc   :  { %3211 = vsyncpa [#allocation6], 1 }
 0xedd   :  { %3212 = vsyncpa [#allocation4], 1 }
 0xede   :  { %3214 = vsyncpa [#allocation4 + $0x1], 1 }

</bundles_post_ra>
